<compile_context>
chip_gen: v6e
topology: v6e:2x2x1
jax: 0.10.0
libtpu: 0.0.40
codegen_flags: <defaults>
</compile_context>

<pallas_src>
import functools

import jax
import jax.numpy as jnp
from jax.experimental import pallas as pl
from jax.experimental.pallas import tpu as pltpu

SEQ = 3      # RelLayer.batch == 3 -> every GRU sequence has length 3
LANE = 128   # TPU vreg lane width


def _round_up(x, m):
    return (x + m - 1) // m * m


def _gru_tanh_kernel(x_ref, h0_ref, wih_ref, whh_ref, bgi_ref, bhn_ref, out_ref,
                     *, hidden, packed):
    """Single-layer GRU over SEQ=3 steps + fused final tanh.

    x_ref   : (SEQ, Bb, Hp)  bf16 time-major input slab (zero-padded lanes)
    h0_ref  : (Bb, Hp)       f32  initial hidden state
    wih_ref : (Hp, G)        bf16 W_ih^T   (G = 128 packed-gates, or 3*Hp per-gate padded)
    whh_ref : (Hp, G)        bf16 W_hh^T   (same gate layout)
    bgi_ref : (1, G)         f32  (b_ir+b_hr | b_iz+b_hz | b_in) in the gate layout
    bhn_ref : (1, G)         f32  b_hn placed in the n-gate slot, zero elsewhere
    out_ref : (SEQ, Bb, Hp)  bf16 tanh(h_t) for every step
    """
    Bb, Hp = h0_ref.shape
    G = wih_ref.shape[1]

    wih = wih_ref[...]
    whh = whh_ref[...]
    bgi = bgi_ref[...]
    bhn = bhn_ref[...]

    # Hoisted input projection: one MXU pass covers all SEQ time steps, bias added once.
    x_all = x_ref[...].reshape(SEQ * Bb, Hp)                         # bf16, tile-aligned
    gi_all = jnp.dot(x_all, wih, preferred_element_type=jnp.float32) + bgi

    h = h0_ref[...]                                                  # f32 state
    if packed:
        # r|z|n packed into lanes [0,H)|[H,2H)|[2H,3H) of a single 128-lane slab (G == Hp).
        lane = jax.lax.broadcasted_iota(jnp.int32, (Bb, Hp), 1)
        keep = lane < hidden
        sh_r_to_n = (2 * hidden) % G
        sh_n_to_0 = (G - 2 * hidden) % G
        sh_z_to_0 = (G - hidden) % G
        for t in range(SEQ):                                         # static, fully unrolled
            gi = gi_all[t * Bb:(t + 1) * Bb]
            gh = jnp.dot(h.astype(jnp.bfloat16), whh,
                         preferred_element_type=jnp.float32)         # (Bb, G) f32
            s = jax.nn.sigmoid(gi + gh)                              # r,z valid; n lanes unused
            r_on_n = pltpu.roll(s, shift=sh_r_to_n, axis=1)          # r -> n-gate lanes (XLU)
            n_full = jnp.tanh(gi + r_on_n * (gh + bhn))              # n valid at [2H,3H)
            n0 = pltpu.roll(n_full, shift=sh_n_to_0, axis=1)         # n -> lanes [0,H)
            z0 = pltpu.roll(s, shift=sh_z_to_0, axis=1)              # z -> lanes [0,H)
            h = n0 + z0 * (h - n0)                                   # (1-z)*n + z*h
            h = jnp.where(keep, h, 0.0)                              # padded lanes stay 0
            out_ref[t] = jnp.tanh(h).astype(out_ref.dtype)           # RelLayer.act = Tanh
    else:
        # Per-gate lane-aligned layout: gate g occupies columns [g*Hp, (g+1)*Hp).
        for t in range(SEQ):
            gi = gi_all[t * Bb:(t + 1) * Bb]
            gh = jnp.dot(h.astype(jnp.bfloat16), whh,
                         preferred_element_type=jnp.float32)         # (Bb, 3*Hp) f32
            rz = jax.nn.sigmoid(gi[:, :2 * Hp] + gh[:, :2 * Hp])     # fused r|z sigmoid
            r = rz[:, :Hp]
            z = rz[:, Hp:]
            n = jnp.tanh(gi[:, 2 * Hp:] + r * (gh[:, 2 * Hp:] + bhn[:, 2 * Hp:]))
            h = n + z * (h - n)
            out_ref[t] = jnp.tanh(h).astype(out_ref.dtype)


def _tpu_kind():
    try:
        return jax.devices()[0].device_kind.lower()
    except Exception:
        return ""


def _tile_plan(B):
    """Generation-aware batch tiling + VMEM cap."""
    kind = _tpu_kind()
    is_v7x = ("v7" in kind) or ("7x" in kind)
    # Only v7x has 2 TensorCores; split only when each block is big enough to amortize
    # the ~0.35us per-grid-step overhead.  Single block otherwise, capped at 512 rows.
    n_blocks = 2 if (is_v7x and B >= 256) else 1
    block_b = _round_up(max(-(-B // n_blocks), 16), 16)   # multiple of 16: bf16 sublane tile
    block_b = min(block_b, 512)
    vmem_limit = (32 if is_v7x else 100) * 1024 * 1024
    return block_b, vmem_limit


def _build_operands(rel_emb, h0, w_ih, w_hh, b_ih, b_hh, block_b):
    """Layout plumbing (plain JAX): pad / pack to lane-dense, MXU-friendly shapes."""
    n_total, H = rel_emb.shape
    B = n_total // SEQ
    Hp = _round_up(H, LANE)
    packed = (3 * H <= LANE)                      # small-H: pack r|z|n into one lane slab
    G = LANE if packed else 3 * Hp
    Bp = _round_up(B, block_b)                    # pad, then slice -> no tail dropping

    x = rel_emb[: B * SEQ].reshape(SEQ, B, H)     # time-major; == torch .reshape(3, B, H)
    x_p = jnp.pad(x, ((0, 0), (0, Bp - B), (0, Hp - H))).astype(jnp.bfloat16)
    h0_p = jnp.pad(h0[0].astype(jnp.float32), ((0, Bp - B), (0, Hp - H)))

    if packed:
        def pad_w(w):                             # (3H, H) -> (Hp, G), gates packed
            return jnp.pad(w.T, ((0, Hp - H), (0, G - 3 * H))).astype(jnp.bfloat16)
        b_rzn = jnp.concatenate([b_ih[:2 * H] + b_hh[:2 * H], b_ih[2 * H:]])
        b_gi = jnp.pad(b_rzn.astype(jnp.float32), (0, G - 3 * H)).reshape(1, G)
        b_hn = jnp.pad(b_hh[2 * H:].astype(jnp.float32), (2 * H, G - 3 * H)).reshape(1, G)
    else:
        def pad_w(w):                             # (3H, H) -> (Hp, 3*Hp), per-gate padded
            wt = w.T.reshape(H, 3, H)             # [:, g, :] = gate g of W^T  (r | z | n)
            wt = jnp.pad(wt, ((0, Hp - H), (0, 0), (0, Hp - H)))
            return wt.reshape(Hp, G).astype(jnp.bfloat16)
        b_rzn = jnp.concatenate(
            [(b_ih[:2 * H] + b_hh[:2 * H]).reshape(2, H), b_ih[2 * H:].reshape(1, H)], 0)
        b_gi = jnp.pad(b_rzn.astype(jnp.float32), ((0, 0), (0, Hp - H))).reshape(1, G)
        b_hn = jnp.zeros((3, Hp), jnp.float32).at[2, :H].set(b_hh[2 * H:]).reshape(1, G)

    operands = (x_p, h0_p, pad_w(w_ih), pad_w(w_hh), b_gi, b_hn)
    meta = (B, H, Hp, G, Bp, packed)
    return operands, meta


def _call_gru(operands, meta, block_b, vmem_limit, weight_mode):
    x_p, h0_p, wih_p, whh_p, b_gi, b_hn = operands
    B, H, Hp, G, Bp, packed = meta
    grid = (Bp // block_b,)

    def const_spec(shape):
        kwargs = {} if weight_mode is None else {"pipeline_mode": weight_mode}
        return pl.BlockSpec(shape, lambda i: (0,) * len(shape), **kwargs)

    kernel = functools.partial(_gru_tanh_kernel, hidden=H, packed=packed)
    return pl.pallas_call(
        kernel,
        out_shape=jax.ShapeDtypeStruct((SEQ, Bp, Hp), jnp.bfloat16),
        grid_spec=pltpu.PrefetchScalarGridSpec(
            num_scalar_prefetch=0,
            grid=grid,
            in_specs=[
                pl.BlockSpec((SEQ, block_b, Hp), lambda i: (0, i, 0)),   # x (bf16, time-major)
                pl.BlockSpec((block_b, Hp), lambda i: (i, 0)),           # h0 (f32)
                const_spec((Hp, G)),                                     # W_ih^T (bf16)
                const_spec((Hp, G)),                                     # W_hh^T (bf16)
                const_spec((1, G)),                                      # folded gi bias (f32)
                const_spec((1, G)),                                      # b_hn slab (f32)
            ],
            out_specs=pl.BlockSpec((SEQ, block_b, Hp), lambda i: (0, i, 0)),
        ),
        compiler_params=pltpu.CompilerParams(
            dimension_semantics=("parallel",),
            vmem_limit_bytes=vmem_limit),
    )(x_p, h0_p, wih_p, whh_p, b_gi, b_hn)


def rel_layer_forward(rel_emb, h0, w_ih, w_hh, b_ih, b_hh, *, block_b=None):
    """rel_emb: (2*n_rel, H); h0: (num_layers=1, num_batches, H); PyTorch GRU params
    w_ih/w_hh (3H, H), b_ih/b_hh (3H,).  Returns (num_batches*3, H) float32."""
    n_total, H = rel_emb.shape
    B = n_total // SEQ

    auto_block, vmem_limit = _tile_plan(B)
    if block_b is None:
        block_b = auto_block
    block_b = max(16, _round_up(block_b, 16))

    operands, meta = _build_operands(rel_emb, h0, w_ih, w_hh, b_ih, b_hh, block_b)

    weight_mode = None
    if hasattr(pl, "Buffered"):
        try:
            weight_mode = pl.Buffered(1)          # single-buffer grid-invariant operands
        except Exception:
            weight_mode = None
    try:
        out = _call_gru(operands, meta, block_b, vmem_limit, weight_mode)
    except Exception:
        if weight_mode is None:
            raise
        # Fallback for JAX builds that reject pipeline_mode on a pallas_call BlockSpec.
        out = _call_gru(operands, meta, block_b, vmem_limit, None)

    # torch: output.transpose(0,1).reshape(num_batches*3, H) == time-major flatten here.
    return out[:, :B, :H].astype(jnp.float32).reshape(SEQ * B, H)


def _reference_forward(rel_emb, h0, w_ih, w_hh, b_ih, b_hh):
    """Pure-JAX f32 GRU reference (PyTorch gate order r,z,n) for validation."""
    n_total, H = rel_emb.shape
    B = n_total // SEQ
    x = rel_emb[: B * SEQ].reshape(SEQ, B, H)
    h = h0[0]
    outs = []
    for t in range(SEQ):
        gi = x[t] @ w_ih.T + b_ih
        gh = h @ w_hh.T + b_hh
        r = jax.nn.sigmoid(gi[:, 0 * H:1 * H] + gh[:, 0 * H:1 * H])
        z = jax.nn.sigmoid(gi[:, 1 * H:2 * H] + gh[:, 1 * H:2 * H])
        n = jnp.tanh(gi[:, 2 * H:3 * H] + r * gh[:, 2 * H:3 * H])
        h = (1.0 - z) * n + z * h
        outs.append(h)
    out = jnp.stack(outs, axis=0)                 # (SEQ, B, H)
    return jnp.tanh(out).reshape(SEQ * B, H)


if __name__ == "__main__":
    # Small, deterministic problem: n_rel=12 -> 2*n_rel=24 relations, h_dim=out_dim=32.
    n_rel = 12
    h_dim = 32
    num_layers = 1
    n_rel2 = 2 * n_rel
    num_batches = n_rel2 // SEQ                   # 8

    key = jax.random.PRNGKey(0)
    k_rel, k_h0, k_wih, k_whh, k_bih, k_bhh = jax.random.split(key, 6)

    rel_emb = jax.random.normal(k_rel, (n_rel2, h_dim), dtype=jnp.float32)

    # get_param(num_layers, num_batches, hidden): deterministic synthetic init for h0.
    h0 = 0.1 * jax.random.normal(k_h0, (num_layers, num_batches, h_dim), dtype=jnp.float32)

    # PyTorch nn.GRU default init: U(-1/sqrt(H), 1/sqrt(H)), shapes (3H, H) / (3H,).
    bound = 1.0 / jnp.sqrt(jnp.float32(h_dim))
    w_ih = jax.random.uniform(k_wih, (3 * h_dim, h_dim), jnp.float32, -bound, bound)
    w_hh = jax.random.uniform(k_whh, (3 * h_dim, h_dim), jnp.float32, -bound, bound)
    b_ih = jax.random.uniform(k_bih, (3 * h_dim,), jnp.float32, -bound, bound)
    b_hh = jax.random.uniform(k_bhh, (3 * h_dim,), jnp.float32, -bound, bound)

    pred = rel_layer_forward(rel_emb, h0, w_ih, w_hh, b_ih, b_hh)
    pred = jax.block_until_ready(pred)

    ref = _reference_forward(rel_emb, h0, w_ih, w_hh, b_ih, b_hh)
    assert pred.shape == (num_batches * SEQ, h_dim)
    # bf16 x / weights / output stream inside the kernel -> loosened tolerance vs f32 ref.
    assert jnp.allclose(pred, ref, rtol=2e-2, atol=5e-2), "mismatch vs JAX reference"

    print("KERNEL_OK")
</pallas_src>

<mosaic_0001>
module attributes {stable_mosaic.version = 11 : i64} {
  func.func @_gru_tanh_kernel(%arg0: i32, %arg1: memref<3x16x128xbf16, #tpu.memory_space<vmem>>, %arg2: memref<16x128xf32, #tpu.memory_space<vmem>>, %arg3: memref<128x128xbf16, #tpu.memory_space<vmem>>, %arg4: memref<128x128xbf16, #tpu.memory_space<vmem>>, %arg5: memref<1x128xf32, #tpu.memory_space<vmem>>, %arg6: memref<1x128xf32, #tpu.memory_space<vmem>>, %arg7: memref<3x16x128xbf16, #tpu.memory_space<vmem>>) attributes {dimension_semantics = [#tpu.dimension_semantics<parallel>], iteration_bounds = array<i64: 1>, scalar_prefetch = 0 : i64, scratch_operands = 0 : i64, tpu.core_type = #tpu.core_type<tc>, window_params = [{transform_indices = @transform_0, window_bounds = array<i64: 3, 16, 128>}, {transform_indices = @transform_1, window_bounds = array<i64: 16, 128>}, {pipeline_mode = #tpu.pipeline_mode<synchronous>, transform_indices = @transform_2, window_bounds = array<i64: 128, 128>}, {pipeline_mode = #tpu.pipeline_mode<synchronous>, transform_indices = @transform_3, window_bounds = array<i64: 128, 128>}, {pipeline_mode = #tpu.pipeline_mode<synchronous>, transform_indices = @transform_4, window_bounds = array<i64: 1, 128>}, {pipeline_mode = #tpu.pipeline_mode<synchronous>, transform_indices = @transform_5, window_bounds = array<i64: 1, 128>}, {transform_indices = @transform_6, window_bounds = array<i64: 3, 16, 128>}]} {
    %c0 = arith.constant 0 : index
    %c0_0 = arith.constant 0 : index
    %0 = vector.load %arg3[%c0, %c0_0] : memref<128x128xbf16, #tpu.memory_space<vmem>>, vector<128x128xbf16>
    %c0_1 = arith.constant 0 : index
    %c0_2 = arith.constant 0 : index
    %1 = vector.load %arg4[%c0_1, %c0_2] : memref<128x128xbf16, #tpu.memory_space<vmem>>, vector<128x128xbf16>
    %c0_3 = arith.constant 0 : index
    %c0_4 = arith.constant 0 : index
    %2 = vector.load %arg5[%c0_3, %c0_4] : memref<1x128xf32, #tpu.memory_space<vmem>>, vector<1x128xf32>
    %c0_5 = arith.constant 0 : index
    %c0_6 = arith.constant 0 : index
    %3 = vector.load %arg6[%c0_5, %c0_6] : memref<1x128xf32, #tpu.memory_space<vmem>>, vector<1x128xf32>
    %c0_7 = arith.constant 0 : index
    %c0_8 = arith.constant 0 : index
    %c0_9 = arith.constant 0 : index
    %4 = vector.load %arg1[%c0_7, %c0_8, %c0_9] : memref<3x16x128xbf16, #tpu.memory_space<vmem>>, vector<3x16x128xbf16>
    %5 = vector.shape_cast %4 : vector<3x16x128xbf16> to vector<48x128xbf16>
    %cst = arith.constant dense<0.000000e+00> : vector<48x128xf32>
    %6 = tpu.matmul %5, %0, %cst {dimension_numbers = #tpu.dot_dimension_numbers<[1], [0], [0], [1], [0, 0, 1, 1], [], []>} : vector<48x128xbf16>, vector<128x128xbf16>, vector<48x128xf32> -> vector<48x128xf32>
    %7 = vector.broadcast %2 : vector<1x128xf32> to vector<48x128xf32>
    %8 = arith.addf %6, %7 : vector<48x128xf32>
    %c0_10 = arith.constant 0 : index
    %c0_11 = arith.constant 0 : index
    %9 = vector.load %arg2[%c0_10, %c0_11] : memref<16x128xf32, #tpu.memory_space<vmem>>, vector<16x128xf32>
    %10 = tpu.iota {dimensions = array<i32: 1>} : vector<16x128xi32>
    %c32_i32 = arith.constant 32 : i32
    %11 = vector.broadcast %c32_i32 : i32 to vector<16x128xi32>
    %12 = arith.cmpi slt, %10, %11 : vector<16x128xi32>
    %13 = vector.extract_strided_slice %8 {offsets = [0, 0], sizes = [16, 128], strides = [1, 1]} : vector<48x128xf32> to vector<16x128xf32>
    %14 = arith.truncf %9 : vector<16x128xf32> to vector<16x128xbf16>
    %cst_12 = arith.constant dense<0.000000e+00> : vector<16x128xf32>
    %15 = tpu.matmul %14, %1, %cst_12 {dimension_numbers = #tpu.dot_dimension_numbers<[1], [0], [0], [1], [0, 0, 1, 1], [], []>} : vector<16x128xbf16>, vector<128x128xbf16>, vector<16x128xf32> -> vector<16x128xf32>
    %16 = arith.addf %13, %15 : vector<16x128xf32>
    %17 = arith.negf %16 : vector<16x128xf32>
    %18 = math.exp %17 : vector<16x128xf32>
    %cst_13 = arith.constant 1.000000e+00 : f32
    %19 = vector.broadcast %cst_13 : f32 to vector<16x128xf32>
    %20 = arith.addf %19, %18 : vector<16x128xf32>
    %21 = arith.divf %19, %20 : vector<16x128xf32>
    %c64_i32 = arith.constant 64 : i32
    %22 = tpu.dynamic_rotate %21 by %c64_i32 dim 1 : vector<16x128xf32>, i32 -> vector<16x128xf32>
    %23 = vector.broadcast %3 : vector<1x128xf32> to vector<16x128xf32>
    %24 = arith.addf %15, %23 : vector<16x128xf32>
    %25 = arith.mulf %22, %24 : vector<16x128xf32>
    %26 = arith.addf %13, %25 : vector<16x128xf32>
    %27 = math.tanh %26 : vector<16x128xf32>
    %c64_i32_14 = arith.constant 64 : i32
    %28 = tpu.dynamic_rotate %27 by %c64_i32_14 dim 1 : vector<16x128xf32>, i32 -> vector<16x128xf32>
    %c96_i32 = arith.constant 96 : i32
    %29 = tpu.dynamic_rotate %21 by %c96_i32 dim 1 : vector<16x128xf32>, i32 -> vector<16x128xf32>
    %30 = arith.subf %9, %28 : vector<16x128xf32>
    %31 = arith.mulf %29, %30 : vector<16x128xf32>
    %32 = arith.addf %28, %31 : vector<16x128xf32>
    %cst_15 = arith.constant 0.000000e+00 : f32
    %33 = vector.broadcast %cst_15 : f32 to vector<16x128xf32>
    %34 = arith.select %12, %32, %33 : vector<16x128xi1>, vector<16x128xf32>
    %35 = math.tanh %34 : vector<16x128xf32>
    %36 = arith.truncf %35 : vector<16x128xf32> to vector<16x128xbf16>
    %c0_16 = arith.constant 0 : index
    %c0_17 = arith.constant 0 : index
    %c0_18 = arith.constant 0 : index
    %37 = vector.load %arg7[%c0_16, %c0_17, %c0_18] : memref<3x16x128xbf16, #tpu.memory_space<vmem>>, vector<1x16x128xbf16>
    %38 = vector.shape_cast %37 : vector<1x16x128xbf16> to vector<16x128xbf16>
    %39 = vector.shape_cast %36 : vector<16x128xbf16> to vector<1x16x128xbf16>
    tpu.vector_store %arg7[%c0_16, %c0_17, %c0_18], %39 {strides = array<i32>} : memref<3x16x128xbf16, #tpu.memory_space<vmem>>, vector<1x16x128xbf16>,
    %40 = vector.extract_strided_slice %8 {offsets = [16, 0], sizes = [16, 128], strides = [1, 1]} : vector<48x128xf32> to vector<16x128xf32>
    %41 = arith.truncf %34 : vector<16x128xf32> to vector<16x128xbf16>
    %cst_19 = arith.constant dense<0.000000e+00> : vector<16x128xf32>
    %42 = tpu.matmul %41, %1, %cst_19 {dimension_numbers = #tpu.dot_dimension_numbers<[1], [0], [0], [1], [0, 0, 1, 1], [], []>} : vector<16x128xbf16>, vector<128x128xbf16>, vector<16x128xf32> -> vector<16x128xf32>
    %43 = arith.addf %40, %42 : vector<16x128xf32>
    %44 = arith.negf %43 : vector<16x128xf32>
    %45 = math.exp %44 : vector<16x128xf32>
    %cst_20 = arith.constant 1.000000e+00 : f32
    %46 = vector.broadcast %cst_20 : f32 to vector<16x128xf32>
    %47 = arith.addf %46, %45 : vector<16x128xf32>
    %48 = arith.divf %46, %47 : vector<16x128xf32>
    %c64_i32_21 = arith.constant 64 : i32
    %49 = tpu.dynamic_rotate %48 by %c64_i32_21 dim 1 : vector<16x128xf32>, i32 -> vector<16x128xf32>
    %50 = vector.broadcast %3 : vector<1x128xf32> to vector<16x128xf32>
    %51 = arith.addf %42, %50 : vector<16x128xf32>
    %52 = arith.mulf %49, %51 : vector<16x128xf32>
    %53 = arith.addf %40, %52 : vector<16x128xf32>
    %54 = math.tanh %53 : vector<16x128xf32>
    %c64_i32_22 = arith.constant 64 : i32
    %55 = tpu.dynamic_rotate %54 by %c64_i32_22 dim 1 : vector<16x128xf32>, i32 -> vector<16x128xf32>
    %c96_i32_23 = arith.constant 96 : i32
    %56 = tpu.dynamic_rotate %48 by %c96_i32_23 dim 1 : vector<16x128xf32>, i32 -> vector<16x128xf32>
    %57 = arith.subf %34, %55 : vector<16x128xf32>
    %58 = arith.mulf %56, %57 : vector<16x128xf32>
    %59 = arith.addf %55, %58 : vector<16x128xf32>
    %cst_24 = arith.constant 0.000000e+00 : f32
    %60 = vector.broadcast %cst_24 : f32 to vector<16x128xf32>
    %61 = arith.select %12, %59, %60 : vector<16x128xi1>, vector<16x128xf32>
    %62 = math.tanh %61 : vector<16x128xf32>
    %63 = arith.truncf %62 : vector<16x128xf32> to vector<16x128xbf16>
    %c1 = arith.constant 1 : index
    %c0_25 = arith.constant 0 : index
    %c0_26 = arith.constant 0 : index
    %64 = vector.load %arg7[%c1, %c0_25, %c0_26] : memref<3x16x128xbf16, #tpu.memory_space<vmem>>, vector<1x16x128xbf16>
    %65 = vector.shape_cast %64 : vector<1x16x128xbf16> to vector<16x128xbf16>
    %66 = vector.shape_cast %63 : vector<16x128xbf16> to vector<1x16x128xbf16>
    tpu.vector_store %arg7[%c1, %c0_25, %c0_26], %66 {strides = array<i32>} : memref<3x16x128xbf16, #tpu.memory_space<vmem>>, vector<1x16x128xbf16>,
    %67 = vector.extract_strided_slice %8 {offsets = [32, 0], sizes = [16, 128], strides = [1, 1]} : vector<48x128xf32> to vector<16x128xf32>
    %68 = arith.truncf %61 : vector<16x128xf32> to vector<16x128xbf16>
    %cst_27 = arith.constant dense<0.000000e+00> : vector<16x128xf32>
    %69 = tpu.matmul %68, %1, %cst_27 {dimension_numbers = #tpu.dot_dimension_numbers<[1], [0], [0], [1], [0, 0, 1, 1], [], []>} : vector<16x128xbf16>, vector<128x128xbf16>, vector<16x128xf32> -> vector<16x128xf32>
    %70 = arith.addf %67, %69 : vector<16x128xf32>
    %71 = arith.negf %70 : vector<16x128xf32>
    %72 = math.exp %71 : vector<16x128xf32>
    %cst_28 = arith.constant 1.000000e+00 : f32
    %73 = vector.broadcast %cst_28 : f32 to vector<16x128xf32>
    %74 = arith.addf %73, %72 : vector<16x128xf32>
    %75 = arith.divf %73, %74 : vector<16x128xf32>
    %c64_i32_29 = arith.constant 64 : i32
    %76 = tpu.dynamic_rotate %75 by %c64_i32_29 dim 1 : vector<16x128xf32>, i32 -> vector<16x128xf32>
    %77 = vector.broadcast %3 : vector<1x128xf32> to vector<16x128xf32>
    %78 = arith.addf %69, %77 : vector<16x128xf32>
    %79 = arith.mulf %76, %78 : vector<16x128xf32>
    %80 = arith.addf %67, %79 : vector<16x128xf32>
    %81 = math.tanh %80 : vector<16x128xf32>
    %c64_i32_30 = arith.constant 64 : i32
    %82 = tpu.dynamic_rotate %81 by %c64_i32_30 dim 1 : vector<16x128xf32>, i32 -> vector<16x128xf32>
    %c96_i32_31 = arith.constant 96 : i32
    %83 = tpu.dynamic_rotate %75 by %c96_i32_31 dim 1 : vector<16x128xf32>, i32 -> vector<16x128xf32>
    %84 = arith.subf %61, %82 : vector<16x128xf32>
    %85 = arith.mulf %83, %84 : vector<16x128xf32>
    %86 = arith.addf %82, %85 : vector<16x128xf32>
    %cst_32 = arith.constant 0.000000e+00 : f32
    %87 = vector.broadcast %cst_32 : f32 to vector<16x128xf32>
    %88 = arith.select %12, %86, %87 : vector<16x128xi1>, vector<16x128xf32>
    %89 = math.tanh %88 : vector<16x128xf32>
    %90 = arith.truncf %89 : vector<16x128xf32> to vector<16x128xbf16>
    %c2 = arith.constant 2 : index
    %c0_33 = arith.constant 0 : index
    %c0_34 = arith.constant 0 : index
    %91 = vector.load %arg7[%c2, %c0_33, %c0_34] : memref<3x16x128xbf16, #tpu.memory_space<vmem>>, vector<1x16x128xbf16>
    %92 = vector.shape_cast %91 : vector<1x16x128xbf16> to vector<16x128xbf16>
    %93 = vector.shape_cast %90 : vector<16x128xbf16> to vector<1x16x128xbf16>
    tpu.vector_store %arg7[%c2, %c0_33, %c0_34], %93 {strides = array<i32>} : memref<3x16x128xbf16, #tpu.memory_space<vmem>>, vector<1x16x128xbf16>,
    return
  }
  func.func @transform_0(%arg0: i32) -> (i32, i32, i32) {
    %c0_i32 = arith.constant 0 : i32
    %c0_i32_0 = arith.constant 0 : i32
    %c0_i32_1 = arith.constant 0 : i32
    return %c0_i32, %arg0, %c0_i32_0 : i32, i32, i32
  }
  func.func @transform_1(%arg0: i32) -> (i32, i32) {
    %c0_i32 = arith.constant 0 : i32
    %c0_i32_0 = arith.constant 0 : i32
    return %arg0, %c0_i32 : i32, i32
  }
  func.func @transform_2(%arg0: i32) -> (i32, i32) {
    %c0_i32 = arith.constant 0 : i32
    %c0_i32_0 = arith.constant 0 : i32
    %c0_i32_1 = arith.constant 0 : i32
    return %c0_i32, %c0_i32_0 : i32, i32
  }
  func.func @transform_3(%arg0: i32) -> (i32, i32) {
    %c0_i32 = arith.constant 0 : i32
    %c0_i32_0 = arith.constant 0 : i32
    %c0_i32_1 = arith.constant 0 : i32
    return %c0_i32, %c0_i32_0 : i32, i32
  }
  func.func @transform_4(%arg0: i32) -> (i32, i32) {
    %c0_i32 = arith.constant 0 : i32
    %c0_i32_0 = arith.constant 0 : i32
    %c0_i32_1 = arith.constant 0 : i32
    return %c0_i32, %c0_i32_0 : i32, i32
  }
  func.func @transform_5(%arg0: i32) -> (i32, i32) {
    %c0_i32 = arith.constant 0 : i32
    %c0_i32_0 = arith.constant 0 : i32
    %c0_i32_1 = arith.constant 0 : i32
    return %c0_i32, %c0_i32_0 : i32, i32
  }
  func.func @transform_6(%arg0: i32) -> (i32, i32, i32) {
    %c0_i32 = arith.constant 0 : i32
    %c0_i32_0 = arith.constant 0 : i32
    %c0_i32_1 = arith.constant 0 : i32
    return %c0_i32, %arg0, %c0_i32_0 : i32, i32, i32
  }
}

module attributes {stable_mosaic.version = 11 : i64} {
  func.func @_gru_tanh_kernel(%arg0: i32, %arg1: memref<3x16x128xbf16, #tpu.memory_space<vmem>>, %arg2: memref<16x128xf32, #tpu.memory_space<vmem>>, %arg3: memref<128x128xbf16, #tpu.memory_space<vmem>>, %arg4: memref<128x128xbf16, #tpu.memory_space<vmem>>, %arg5: memref<1x128xf32, #tpu.memory_space<vmem>>, %arg6: memref<1x128xf32, #tpu.memory_space<vmem>>, %arg7: memref<3x16x128xbf16, #tpu.memory_space<vmem>>) attributes {dimension_semantics = [#tpu.dimension_semantics<parallel>], iteration_bounds = array<i64: 1>, scalar_prefetch = 0 : i64, scratch_operands = 0 : i64, tpu.core_type = #tpu.core_type<tc>, window_params = [{transform_indices = @transform_0, window_bounds = array<i64: 3, 16, 128>}, {transform_indices = @transform_1, window_bounds = array<i64: 16, 128>}, {pipeline_mode = #tpu.pipeline_mode<synchronous>, transform_indices = @transform_2, window_bounds = array<i64: 128, 128>}, {pipeline_mode = #tpu.pipeline_mode<synchronous>, transform_indices = @transform_3, window_bounds = array<i64: 128, 128>}, {pipeline_mode = #tpu.pipeline_mode<synchronous>, transform_indices = @transform_4, window_bounds = array<i64: 1, 128>}, {pipeline_mode = #tpu.pipeline_mode<synchronous>, transform_indices = @transform_5, window_bounds = array<i64: 1, 128>}, {transform_indices = @transform_6, window_bounds = array<i64: 3, 16, 128>}]} {
    %c0 = arith.constant 0 : index
    %c0_0 = arith.constant 0 : index
    %0 = vector.load %arg3[%c0, %c0_0] : memref<128x128xbf16, #tpu.memory_space<vmem>>, vector<128x128xbf16>
    %c0_1 = arith.constant 0 : index
    %c0_2 = arith.constant 0 : index
    %1 = vector.load %arg4[%c0_1, %c0_2] : memref<128x128xbf16, #tpu.memory_space<vmem>>, vector<128x128xbf16>
    %c0_3 = arith.constant 0 : index
    %c0_4 = arith.constant 0 : index
    %2 = vector.load %arg5[%c0_3, %c0_4] : memref<1x128xf32, #tpu.memory_space<vmem>>, vector<1x128xf32>
    %c0_5 = arith.constant 0 : index
    %c0_6 = arith.constant 0 : index
    %3 = vector.load %arg6[%c0_5, %c0_6] : memref<1x128xf32, #tpu.memory_space<vmem>>, vector<1x128xf32>
    %c0_7 = arith.constant 0 : index
    %c0_8 = arith.constant 0 : index
    %c0_9 = arith.constant 0 : index
    %4 = vector.load %arg1[%c0_7, %c0_8, %c0_9] : memref<3x16x128xbf16, #tpu.memory_space<vmem>>, vector<3x16x128xbf16>
    %5 = vector.shape_cast %4 : vector<3x16x128xbf16> to vector<48x128xbf16>
    %cst = arith.constant dense<0.000000e+00> : vector<48x128xf32>
    %6 = tpu.matmul %5, %0, %cst {dimension_numbers = #tpu.dot_dimension_numbers<[1], [0], [0], [1], [0, 0, 1, 1], [], []>} : vector<48x128xbf16>, vector<128x128xbf16>, vector<48x128xf32> -> vector<48x128xf32>
    %7 = vector.broadcast %2 : vector<1x128xf32> to vector<48x128xf32>
    %8 = arith.addf %6, %7 : vector<48x128xf32>
    %c0_10 = arith.constant 0 : index
    %c0_11 = arith.constant 0 : index
    %9 = vector.load %arg2[%c0_10, %c0_11] : memref<16x128xf32, #tpu.memory_space<vmem>>, vector<16x128xf32>
    %10 = tpu.iota {dimensions = array<i32: 1>} : vector<16x128xi32>
    %c32_i32 = arith.constant 32 : i32
    %11 = vector.broadcast %c32_i32 : i32 to vector<16x128xi32>
    %12 = arith.cmpi slt, %10, %11 : vector<16x128xi32>
    %13 = vector.extract_strided_slice %8 {offsets = [0, 0], sizes = [16, 128], strides = [1, 1]} : vector<48x128xf32> to vector<16x128xf32>
    %14 = arith.truncf %9 : vector<16x128xf32> to vector<16x128xbf16>
    %cst_12 = arith.constant dense<0.000000e+00> : vector<16x128xf32>
    %15 = tpu.matmul %14, %1, %cst_12 {dimension_numbers = #tpu.dot_dimension_numbers<[1], [0], [0], [1], [0, 0, 1, 1], [], []>} : vector<16x128xbf16>, vector<128x128xbf16>, vector<16x128xf32> -> vector<16x128xf32>
    %16 = arith.addf %13, %15 : vector<16x128xf32>
    %17 = arith.negf %16 : vector<16x128xf32>
    %18 = math.exp %17 : vector<16x128xf32>
    %cst_13 = arith.constant 1.000000e+00 : f32
    %19 = vector.broadcast %cst_13 : f32 to vector<16x128xf32>
    %20 = arith.addf %19, %18 : vector<16x128xf32>
    %21 = arith.divf %19, %20 : vector<16x128xf32>
    %c64_i32 = arith.constant 64 : i32
    %22 = tpu.dynamic_rotate %21 by %c64_i32 dim 1 : vector<16x128xf32>, i32 -> vector<16x128xf32>
    %23 = vector.broadcast %3 : vector<1x128xf32> to vector<16x128xf32>
    %24 = arith.addf %15, %23 : vector<16x128xf32>
    %25 = arith.mulf %22, %24 : vector<16x128xf32>
    %26 = arith.addf %13, %25 : vector<16x128xf32>
    %27 = math.tanh %26 : vector<16x128xf32>
    %c64_i32_14 = arith.constant 64 : i32
    %28 = tpu.dynamic_rotate %27 by %c64_i32_14 dim 1 : vector<16x128xf32>, i32 -> vector<16x128xf32>
    %c96_i32 = arith.constant 96 : i32
    %29 = tpu.dynamic_rotate %21 by %c96_i32 dim 1 : vector<16x128xf32>, i32 -> vector<16x128xf32>
    %30 = arith.subf %9, %28 : vector<16x128xf32>
    %31 = arith.mulf %29, %30 : vector<16x128xf32>
    %32 = arith.addf %28, %31 : vector<16x128xf32>
    %cst_15 = arith.constant 0.000000e+00 : f32
    %33 = vector.broadcast %cst_15 : f32 to vector<16x128xf32>
    %34 = arith.select %12, %32, %33 : vector<16x128xi1>, vector<16x128xf32>
    %35 = math.tanh %34 : vector<16x128xf32>
    %36 = arith.truncf %35 : vector<16x128xf32> to vector<16x128xbf16>
    %c0_16 = arith.constant 0 : index
    %c0_17 = arith.constant 0 : index
    %c0_18 = arith.constant 0 : index
    %37 = vector.load %arg7[%c0_16, %c0_17, %c0_18] : memref<3x16x128xbf16, #tpu.memory_space<vmem>>, vector<1x16x128xbf16>
    %38 = vector.shape_cast %37 : vector<1x16x128xbf16> to vector<16x128xbf16>
    %39 = vector.shape_cast %36 : vector<16x128xbf16> to vector<1x16x128xbf16>
    tpu.vector_store %arg7[%c0_16, %c0_17, %c0_18], %39 {strides = array<i32>} : memref<3x16x128xbf16, #tpu.memory_space<vmem>>, vector<1x16x128xbf16>,
    %40 = vector.extract_strided_slice %8 {offsets = [16, 0], sizes = [16, 128], strides = [1, 1]} : vector<48x128xf32> to vector<16x128xf32>
    %41 = arith.truncf %34 : vector<16x128xf32> to vector<16x128xbf16>
    %cst_19 = arith.constant dense<0.000000e+00> : vector<16x128xf32>
    %42 = tpu.matmul %41, %1, %cst_19 {dimension_numbers = #tpu.dot_dimension_numbers<[1], [0], [0], [1], [0, 0, 1, 1], [], []>} : vector<16x128xbf16>, vector<128x128xbf16>, vector<16x128xf32> -> vector<16x128xf32>
    %43 = arith.addf %40, %42 : vector<16x128xf32>
    %44 = arith.negf %43 : vector<16x128xf32>
    %45 = math.exp %44 : vector<16x128xf32>
    %cst_20 = arith.constant 1.000000e+00 : f32
    %46 = vector.broadcast %cst_20 : f32 to vector<16x128xf32>
    %47 = arith.addf %46, %45 : vector<16x128xf32>
    %48 = arith.divf %46, %47 : vector<16x128xf32>
    %c64_i32_21 = arith.constant 64 : i32
    %49 = tpu.dynamic_rotate %48 by %c64_i32_21 dim 1 : vector<16x128xf32>, i32 -> vector<16x128xf32>
    %50 = vector.broadcast %3 : vector<1x128xf32> to vector<16x128xf32>
    %51 = arith.addf %42, %50 : vector<16x128xf32>
    %52 = arith.mulf %49, %51 : vector<16x128xf32>
    %53 = arith.addf %40, %52 : vector<16x128xf32>
    %54 = math.tanh %53 : vector<16x128xf32>
    %c64_i32_22 = arith.constant 64 : i32
    %55 = tpu.dynamic_rotate %54 by %c64_i32_22 dim 1 : vector<16x128xf32>, i32 -> vector<16x128xf32>
    %c96_i32_23 = arith.constant 96 : i32
    %56 = tpu.dynamic_rotate %48 by %c96_i32_23 dim 1 : vector<16x128xf32>, i32 -> vector<16x128xf32>
    %57 = arith.subf %34, %55 : vector<16x128xf32>
    %58 = arith.mulf %56, %57 : vector<16x128xf32>
    %59 = arith.addf %55, %58 : vector<16x128xf32>
    %cst_24 = arith.constant 0.000000e+00 : f32
    %60 = vector.broadcast %cst_24 : f32 to vector<16x128xf32>
    %61 = arith.select %12, %59, %60 : vector<16x128xi1>, vector<16x128xf32>
    %62 = math.tanh %61 : vector<16x128xf32>
    %63 = arith.truncf %62 : vector<16x128xf32> to vector<16x128xbf16>
    %c1 = arith.constant 1 : index
    %c0_25 = arith.constant 0 : index
    %c0_26 = arith.constant 0 : index
    %64 = vector.load %arg7[%c1, %c0_25, %c0_26] : memref<3x16x128xbf16, #tpu.memory_space<vmem>>, vector<1x16x128xbf16>
    %65 = vector.shape_cast %64 : vector<1x16x128xbf16> to vector<16x128xbf16>
    %66 = vector.shape_cast %63 : vector<16x128xbf16> to vector<1x16x128xbf16>
    tpu.vector_store %arg7[%c1, %c0_25, %c0_26], %66 {strides = array<i32>} : memref<3x16x128xbf16, #tpu.memory_space<vmem>>, vector<1x16x128xbf16>,
    %67 = vector.extract_strided_slice %8 {offsets = [32, 0], sizes = [16, 128], strides = [1, 1]} : vector<48x128xf32> to vector<16x128xf32>
    %68 = arith.truncf %61 : vector<16x128xf32> to vector<16x128xbf16>
    %cst_27 = arith.constant dense<0.000000e+00> : vector<16x128xf32>
    %69 = tpu.matmul %68, %1, %cst_27 {dimension_numbers = #tpu.dot_dimension_numbers<[1], [0], [0], [1], [0, 0, 1, 1], [], []>} : vector<16x128xbf16>, vector<128x128xbf16>, vector<16x128xf32> -> vector<16x128xf32>
    %70 = arith.addf %67, %69 : vector<16x128xf32>
    %71 = arith.negf %70 : vector<16x128xf32>
    %72 = math.exp %71 : vector<16x128xf32>
    %cst_28 = arith.constant 1.000000e+00 : f32
    %73 = vector.broadcast %cst_28 : f32 to vector<16x128xf32>
    %74 = arith.addf %73, %72 : vector<16x128xf32>
    %75 = arith.divf %73, %74 : vector<16x128xf32>
    %c64_i32_29 = arith.constant 64 : i32
    %76 = tpu.dynamic_rotate %75 by %c64_i32_29 dim 1 : vector<16x128xf32>, i32 -> vector<16x128xf32>
    %77 = vector.broadcast %3 : vector<1x128xf32> to vector<16x128xf32>
    %78 = arith.addf %69, %77 : vector<16x128xf32>
    %79 = arith.mulf %76, %78 : vector<16x128xf32>
    %80 = arith.addf %67, %79 : vector<16x128xf32>
    %81 = math.tanh %80 : vector<16x128xf32>
    %c64_i32_30 = arith.constant 64 : i32
    %82 = tpu.dynamic_rotate %81 by %c64_i32_30 dim 1 : vector<16x128xf32>, i32 -> vector<16x128xf32>
    %c96_i32_31 = arith.constant 96 : i32
    %83 = tpu.dynamic_rotate %75 by %c96_i32_31 dim 1 : vector<16x128xf32>, i32 -> vector<16x128xf32>
    %84 = arith.subf %61, %82 : vector<16x128xf32>
    %85 = arith.mulf %83, %84 : vector<16x128xf32>
    %86 = arith.addf %82, %85 : vector<16x128xf32>
    %cst_32 = arith.constant 0.000000e+00 : f32
    %87 = vector.broadcast %cst_32 : f32 to vector<16x128xf32>
    %88 = arith.select %12, %86, %87 : vector<16x128xi1>, vector<16x128xf32>
    %89 = math.tanh %88 : vector<16x128xf32>
    %90 = arith.truncf %89 : vector<16x128xf32> to vector<16x128xbf16>
    %c2 = arith.constant 2 : index
    %c0_33 = arith.constant 0 : index
    %c0_34 = arith.constant 0 : index
    %91 = vector.load %arg7[%c2, %c0_33, %c0_34] : memref<3x16x128xbf16, #tpu.memory_space<vmem>>, vector<1x16x128xbf16>
    %92 = vector.shape_cast %91 : vector<1x16x128xbf16> to vector<16x128xbf16>
    %93 = vector.shape_cast %90 : vector<16x128xbf16> to vector<1x16x128xbf16>
    tpu.vector_store %arg7[%c2, %c0_33, %c0_34], %93 {strides = array<i32>} : memref<3x16x128xbf16, #tpu.memory_space<vmem>>, vector<1x16x128xbf16>,
    return
  }
  func.func @transform_0(%arg0: i32) -> (i32, i32, i32) {
    %c0_i32 = arith.constant 0 : i32
    %c0_i32_0 = arith.constant 0 : i32
    %c0_i32_1 = arith.constant 0 : i32
    return %c0_i32, %arg0, %c0_i32_0 : i32, i32, i32
  }
  func.func @transform_1(%arg0: i32) -> (i32, i32) {
    %c0_i32 = arith.constant 0 : i32
    %c0_i32_0 = arith.constant 0 : i32
    return %arg0, %c0_i32 : i32, i32
  }
  func.func @transform_2(%arg0: i32) -> (i32, i32) {
    %c0_i32 = arith.constant 0 : i32
    %c0_i32_0 = arith.constant 0 : i32
    %c0_i32_1 = arith.constant 0 : i32
    return %c0_i32, %c0_i32_0 : i32, i32
  }
  func.func @transform_3(%arg0: i32) -> (i32, i32) {
    %c0_i32 = arith.constant 0 : i32
    %c0_i32_0 = arith.constant 0 : i32
    %c0_i32_1 = arith.constant 0 : i32
    return %c0_i32, %c0_i32_0 : i32, i32
  }
  func.func @transform_4(%arg0: i32) -> (i32, i32) {
    %c0_i32 = arith.constant 0 : i32
    %c0_i32_0 = arith.constant 0 : i32
    %c0_i32_1 = arith.constant 0 : i32
    return %c0_i32, %c0_i32_0 : i32, i32
  }
  func.func @transform_5(%arg0: i32) -> (i32, i32) {
    %c0_i32 = arith.constant 0 : i32
    %c0_i32_0 = arith.constant 0 : i32
    %c0_i32_1 = arith.constant 0 : i32
    return %c0_i32, %c0_i32_0 : i32, i32
  }
  func.func @transform_6(%arg0: i32) -> (i32, i32, i32) {
    %c0_i32 = arith.constant 0 : i32
    %c0_i32_0 = arith.constant 0 : i32
    %c0_i32_1 = arith.constant 0 : i32
    return %c0_i32, %arg0, %c0_i32_0 : i32, i32, i32
  }
}

</mosaic_0001>

<bundles_post_ra>
// kernel: tpu_custom_call.1
= control target key start
LH: loop header
LB: loop body
LE: loop exit
PB: predicated region body
PF: predicated region fallthrough
CT: control target
= control target key end

     0   :  { %11 = vsyncpa [#allocation3], 0  ;;  %s1185_s0 = inlined_call_operand.hbm [shape: bf16[3,16,128], index: 0, kind: input, shape index: {}]   ;;  %s1186_s1 = inlined_call_operand.hbm [shape: f32[16,128], index: 1, kind: input, shape index: {}]   ;;  %s1187_s2 = inlined_call_operand.hbm [shape: bf16[128,128], index: 2, kind: input, shape index: {}]   ;;  %s1188_s3 = inlined_call_operand.hbm [shape: bf16[128,128], index: 3, kind: input, shape index: {}]   ;;  %s1189_s4 = inlined_call_operand.vmem [shape: f32[1,128], index: 4, kind: input, shape index: {}]   ;;  %s1190_s5 = inlined_call_operand.vmem [shape: f32[1,128], index: 5, kind: input, shape index: {}]   ;;  %s1191_s6 = inlined_call_operand.hbm [shape: bf16[3,16,128], index: 6, kind: output, shape index: {}]  }
   0x1   :  { %12 = vsyncpa [#allocation6], 0 }
   0x2   :  { %13 = vsyncpa [#allocation9], 0 }
   0x3   :  { %14 = vsyncpa [#allocation4], 0  ;;  %s990_s21 = smov [#allocation5]  }
   0x4   :  { %s32_s22 = sshll.u32 %s990_s21, 4  ;;  %s33_s22 = int_to_ptr.vmem [resolvable:$true] %s32_s22 }
   0x5   :  { %s890_s23 = scalar_lea.vmem %s33_s22, 256  ;;  %p895_p1 = scmp.lt.s32.totalorder %s33_s22, %s33_s22 }
   0x6   :  { %p891_p0 = scmp.ne.s32.totalorder %s33_s22, %s890_s23  ;;  %p896_p2 = scmp.lt.s32.totalorder %s890_s23, %s890_s23 }
   0x8   :  { %p897_p3 = por %p896_p2, %p895_p1 }
   0xa   :  { %p898_p4 = pnand %p897_p3, %p891_p0 }
   0xc   :  { %901 = shalt.err (!%p898_p4)
}
   0xd   :  { %s991_s24 = smov 128   ;;  %s992_s25 = smov 8  }
   0xe   :  { %38 = dma.hbm_to_vmem [thread:$0]  %s1186_s1, 256, %s33_s22, [#allocation6], %s991_s24, %s991_s24, %s992_s25  }
   0xf   :  { %s993_s28 = smov [#allocation2]  }
  0x10   :  { %s20_s29 = sshll.u32 %s993_s28, 4  ;;  %s21_s29 = int_to_ptr.vmem [resolvable:$true] %s20_s29 }
  0x11   :  { %s910_s30 = scalar_lea.vmem %s21_s29, 384  ;;  %p915_p6 = scmp.lt.s32.totalorder %s21_s29, %s21_s29 }
  0x12   :  { %p911_p5 = scmp.ne.s32.totalorder %s21_s29, %s910_s30  ;;  %p916_p7 = scmp.lt.s32.totalorder %s910_s30, %s910_s30 }
  0x14   :  { %p917_p8 = por %p916_p7, %p915_p6 }
  0x16   :  { %p918_p9 = pnand %p917_p8, %p911_p5 }
  0x18   :  { %921 = shalt.err (!%p918_p9)
}
  0x19   :  { %s994_s7 = smov 64   ;;  %s995_s8 = smov 4  }
  0x1a   :  { %26 = dma.hbm_to_vmem [thread:$0]  %s1185_s0, 384, %s21_s29, [#allocation3], %s994_s7, %s994_s7, %s995_s8  }
  0x1b   :  { %s996_s1 = smov [#allocation7]   ;;  %s997_s12 = smov [#allocation8]  }
  0x1c   :  { %s44_s11 = sshll.u32 %s996_s1, 4  ;;  %s56_s13 = sshll.u32 %s997_s12, 4  ;;  %s45_s11 = int_to_ptr.vmem [resolvable:$true] %s44_s11  ;;  %s57_s13 = int_to_ptr.vmem [resolvable:$true] %s56_s13 }
  0x1d   :  { %s930_s14 = scalar_lea.vmem %s45_s11, 1024  ;;  %p935_p11 = scmp.lt.s32.totalorder %s45_s11, %s45_s11 }
  0x1e   :  { %p931_p10 = scmp.ne.s32.totalorder %s45_s11, %s930_s14  ;;  %p936_p12 = scmp.lt.s32.totalorder %s930_s14, %s930_s14 }
  0x20   :  { %p937_p13 = por %p936_p12, %p935_p11 }
  0x22   :  { %p938_p0 = pnand %p937_p13, %p931_p10 }
  0x24   :  { %941 = shalt.err (!%p938_p0)
}
  0x25   :  { %50 = dma.hbm_to_vmem [thread:$0]  %s1187_s2, 1024, %s45_s11, [#allocation6], %s994_s7, %s994_s7, %s995_s8  }
  0x26   :  { %s950_s0 = scalar_lea.vmem %s57_s13, 1024  ;;  %p955_p2 = scmp.lt.s32.totalorder %s57_s13, %s57_s13 }
  0x27   :  { %p951_p1 = scmp.ne.s32.totalorder %s57_s13, %s950_s0  ;;  %p956_p3 = scmp.lt.s32.totalorder %s950_s0, %s950_s0 }
  0x29   :  { %p957_p4 = por %p956_p3, %p955_p2 }
  0x2b   :  { %p958_p5 = pnand %p957_p4, %p951_p1 }
  0x2d   :  { %961 = shalt.err (!%p958_p5)
}
  0x2e   :  { %62 = dma.hbm_to_vmem [thread:$0]  %s1188_s3, 1024, %s57_s13, [#allocation9], %s994_s7, %s994_s7, %s995_s8  }
  0x2f   :  { %982 = dma.done.wait [#allocation3], 384  }
  0x30   :  { %983 = vsyncadd [#allocation3], 4294966912 }
  0x31   :  { %984 = dma.done.wait [#allocation6], 1280  }
  0x32   :  { %985 = vsyncadd [#allocation6], 4294966016 }
  0x33   :  { %986 = dma.done.wait [#allocation9], 1024  }
  0x34   :  { %987 = vsyncadd [#allocation9], 4294966272  ;;  %v998_v0 = vmov 0.0   ;;  %vm999_vm0 = vmmov 0   ;;  %v815_v1 = vld [vmem:[#allocation7 + $0x38] sm:$0xff]   ;;  %v817_v3 = vld [vmem:[#allocation7 + $0x30] sm:$0xff]   ;;  %v251_v59 = vlaneseq }
  0x35   :  { %715 = vmatprep.subr.bf16.mxu0 %v998_v0  ;;  %743 = vmatprep.subr.bf16.mxu1 %v998_v0  ;;  %v816_v2 = vld [vmem:[#allocation8 + $0x38] sm:$0xff]   ;;  %v818_v4 = vld [vmem:[#allocation8 + $0x30] sm:$0xff]   ;;  %v819_v5 = vld [vmem:[#allocation7 + $0x28] sm:$0xff]  }
  0x36   :  { %731 = vmatprep.mubr.msk.bf16.mxu0 %vm999_vm0, %v998_v0  ;;  %759 = vmatprep.mubr.msk.bf16.mxu1 %vm999_vm0, %v998_v0  ;;  %v820_v6 = vld [vmem:[#allocation8 + $0x28] sm:$0xff]   ;;  %v821_v7 = vld [vmem:[#allocation7 + $0x20] sm:$0xff]   ;;  %v823_v9 = vld [vmem:[#allocation7 + $0x18] sm:$0xff]  }
  0x37   :  { %716 = vmatpush3.bf16.msra.mxu0 %v815_v1  ;;  %744 = vmatpush3.bf16.msra.mxu1 %v816_v2  ;;  %v822_v8 = vld [vmem:[#allocation8 + $0x20] sm:$0xff]   ;;  %v824_v10 = vld [vmem:[#allocation8 + $0x18] sm:$0xff]   ;;  %v825_v11 = vld [vmem:[#allocation7 + $0x10] sm:$0xff]  }
  0x38   :  { %717 = vmatprep.subr.bf16.mxu0 %v998_v0  ;;  %745 = vmatprep.subr.bf16.mxu1 %v998_v0  ;;  %v826_v12 = vld [vmem:[#allocation8 + $0x10] sm:$0xff]   ;;  %v827_v13 = vld [vmem:[#allocation7 + $0x8] sm:$0xff]   ;;  %v829_v15 = vld [vmem:[#allocation7] sm:$0xff]  }
  0x39   :  { %v828_v14 = vld [vmem:[#allocation8 + $0x8] sm:$0xff]   ;;  %v830_v16 = vld [vmem:[#allocation8] sm:$0xff]   ;;  %v1077_v17 = vld [vmem:[#allocation5] sm:$0xff] }
  0x3a   :  { %v1079_v18 = vld [vmem:[#allocation5 + $0x8] sm:$0xff]  ;;  %v832_v42 = vld [vmem:[#allocation2 + $0x8] sm:$0xff]   ;;  %v833_v51 = vld [vmem:[#allocation2 + $0x10] sm:$0xff]  }
  0x3b   :  { %718 = vmatpush3.bf16.msra.mxu0 %v817_v3  ;;  %746 = vmatpush3.bf16.msra.mxu1 %v818_v4  ;;  %v831_v19 = vld [vmem:[#allocation2] sm:$0xff]   ;;  %v254_v20 = vpack.c.bf16 %v1079_v18, %v1077_v17 }
  0x3c   :  { %719 = vmatprep.subr.bf16.mxu0 %v998_v0  ;;  %747 = vmatprep.subr.bf16.mxu1 %v998_v0  ;;  %v1107_v21 = vld [vmem:[%s1189_s4] ss:$0 sm:$0xff]  ;;  %s1000_s4 = smov 96  }
  0x3d   :  { %v1119_v43 = vld [vmem:[%s1190_s5] ss:$0 sm:$0xff]  ;;  %s1001_s5 = smov [#allocation10]  }
  0x3e   :  { %s603_s21 = sshll.u32 %s1001_s5, 4  ;;  %s604_s21 = int_to_ptr.vmem [resolvable:$true] %s603_s21 }
  0x3f   :  { %720 = vmatpush3.bf16.msra.mxu0 %v819_v5  ;;  %748 = vmatpush3.bf16.msra.mxu1 %v820_v6  ;;  %s962_s22 = scalar_lea.vmem %s604_s21, 384  ;;  %p967_p7 = scmp.lt.s32.totalorder %s604_s21, %s604_s21 }
  0x40   :  { %721 = vmatprep.subr.bf16.mxu0 %v998_v0  ;;  %749 = vmatprep.subr.bf16.mxu1 %v998_v0  ;;  %p963_p6 = scmp.ne.s32.totalorder %s604_s21, %s962_s22  ;;  %p968_p8 = scmp.lt.s32.totalorder %s962_s22, %s962_s22 }
  0x42   :  { %p969_p9 = por %p968_p8, %p967_p7 }
  0x43   :  { %722 = vmatpush3.bf16.msra.mxu0 %v821_v7  ;;  %750 = vmatpush3.bf16.msra.mxu1 %v822_v8 }
  0x44   :  { %723 = vmatprep.subr.bf16.mxu0 %v998_v0  ;;  %751 = vmatprep.subr.bf16.mxu1 %v998_v0  ;;  %p970_p10 = pnand %p969_p9, %p963_p6 }
  0x47   :  { %724 = vmatpush3.bf16.msra.mxu0 %v823_v9  ;;  %752 = vmatpush3.bf16.msra.mxu1 %v824_v10 }
  0x48   :  { %725 = vmatprep.subr.bf16.mxu0 %v998_v0  ;;  %753 = vmatprep.subr.bf16.mxu1 %v998_v0 }
  0x4b   :  { %726 = vmatpush3.bf16.msra.mxu0 %v825_v11  ;;  %754 = vmatpush3.bf16.msra.mxu1 %v826_v12 }
  0x4c   :  { %727 = vmatprep.subr.bf16.mxu0 %v998_v0  ;;  %755 = vmatprep.subr.bf16.mxu1 %v998_v0 }
  0x4f   :  { %728 = vmatpush3.bf16.msra.mxu0 %v827_v13  ;;  %756 = vmatpush3.bf16.msra.mxu1 %v828_v14 }
  0x50   :  { %729 = vmatprep.subr.bf16.mxu0 %v998_v0  ;;  %757 = vmatprep.subr.bf16.mxu1 %v998_v0 }
  0x53   :  { %730 = vmatpush3.bf16.msra.mxu0 %v829_v15  ;;  %758 = vmatpush3.bf16.msra.mxu1 %v830_v16 }
  0x54   :  { %763 = vmatprep.subr.bf16.mxu0 %v998_v0  ;;  %783 = vmatprep.subr.bf16.mxu1 %v998_v0 }
  0x56   :  { %732 = vmatmul.mubr.bf16.vlgmr.msra.gmra.mxu0 %v831_v19  ;;  %760 = vmatmul.mubr.bf16.vlgmr.msra.gmra.mxu1 %v254_v20 }
  0x57   :  { %764 = vmatpush3.bf16.msra.mxu0 %v816_v2  ;;  %735 = vmatprep.mubr.msk.bf16.mxu0 %vm999_vm0, %v998_v0 }
  0x58   :  { %765 = vmatprep.subr.bf16.mxu0 %v998_v0  ;;  %784 = vmatpush3.bf16.msra.mxu1 %v816_v2 }
  0x59   :  { %799 = vmatprep.mubr.msk.bf16.mxu1 %vm999_vm0, %v998_v0  ;;  %785 = vmatprep.subr.bf16.mxu1 %v998_v0 }
  0x5b   :  { %766 = vmatpush3.bf16.msra.mxu0 %v818_v4 }
  0x5c   :  { %767 = vmatprep.subr.bf16.mxu0 %v998_v0  ;;  %786 = vmatpush3.bf16.msra.mxu1 %v818_v4 }
  0x5d   :  { %787 = vmatprep.subr.bf16.mxu1 %v998_v0 }
  0x5e   :  { %736 = vmatmul.mubr.bf16.gmra.mxu0 %v832_v42 }
  0x5f   :  { %768 = vmatpush3.bf16.msra.mxu0 %v820_v6  ;;  %739 = vmatprep.mubr.msk.bf16.mxu0 %vm999_vm0, %v998_v0 }
  0x60   :  { %769 = vmatprep.subr.bf16.mxu0 %v998_v0  ;;  %788 = vmatpush3.bf16.msra.mxu1 %v820_v6 }
  0x61   :  { %789 = vmatprep.subr.bf16.mxu1 %v998_v0 }
  0x63   :  { %770 = vmatpush3.bf16.msra.mxu0 %v822_v8 }
  0x64   :  { %771 = vmatprep.subr.bf16.mxu0 %v998_v0  ;;  %790 = vmatpush3.bf16.msra.mxu1 %v822_v8 }
  0x65   :  { %791 = vmatprep.subr.bf16.mxu1 %v998_v0 }
  0x66   :  { %740 = vmatmul.mubr.bf16.gmra.mxu0 %v833_v51 }
  0x67   :  { %772 = vmatpush3.bf16.msra.mxu0 %v824_v10  ;;  %779 = vmatprep.mubr.msk.bf16.mxu0 %vm999_vm0, %v998_v0 }
  0x68   :  { %773 = vmatprep.subr.bf16.mxu0 %v998_v0  ;;  %792 = vmatpush3.bf16.msra.mxu1 %v824_v10 }
  0x69   :  { %793 = vmatprep.subr.bf16.mxu1 %v998_v0 }
  0x6b   :  { %774 = vmatpush3.bf16.msra.mxu0 %v826_v12 }
  0x6c   :  { %775 = vmatprep.subr.bf16.mxu0 %v998_v0  ;;  %794 = vmatpush3.bf16.msra.mxu1 %v826_v12 }
  0x6d   :  { %795 = vmatprep.subr.bf16.mxu1 %v998_v0 }
  0x6f   :  { %776 = vmatpush3.bf16.msra.mxu0 %v828_v14 }
  0x70   :  { %777 = vmatprep.subr.bf16.mxu0 %v998_v0  ;;  %796 = vmatpush3.bf16.msra.mxu1 %v828_v14 }
  0x71   :  { %797 = vmatprep.subr.bf16.mxu1 %v998_v0  ;;  %v1129_v0 = vand.u32 127, %v251_v59 }
  0x73   :  { %778 = vmatpush3.bf16.msra.mxu0 %v830_v16  ;;  %vm253_vm1 = vcmp.lt.s32.totalorder %v1129_v0, 32 }
  0x74   :  { %798 = vmatpush3.bf16.msra.mxu1 %v830_v16  ;;  %vm1138_vm2 = vmpackc.low %vm253_vm1, %vm253_vm1 }
 0x116   :  { %v226_v22 = vpop.f32.mrf.mxu0  ;;  %v337_v24 = vpop.f32.mrf.mxu1 }
 0x117   :  { %v227_v23 = vadd.f32 %v1107_v21, %v226_v22  ;;  %v368_v44 = vadd.f32 %v1119_v43, %v337_v24 }
 0x118   :  { %v733_v25 = vpop.f32.mrf.mxu0  ;;  %v761_v27 = vpop.f32.mrf.mxu1 }
 0x119   :  { %v344_v26 = vadd.f32 %v337_v24, %v227_v23 }
 0x11a   :  { %v229_v28 = vpop.f32.mrf.mxu0  ;;  %v340_v31 = vpop.f32.mrf.mxu1 }
 0x11b   :  { %v637_v29 = vmul.f32 -1.442695, %v344_v26  ;;  %v230_v30 = vadd.f32 %v1107_v21, %v229_v28  ;;  %v369_v47 = vadd.f32 %v1119_v43, %v340_v31 }
 0x11c   :  { %v734_v32 = vpop.f32.mrf.mxu0  ;;  %v762_v34 = vpop.f32.mrf.mxu1 }
 0x11d   :  { %834 = vpow2.f32 %v637_v29  ;;  %v345_v33 = vadd.f32 %v340_v31, %v230_v30 }
 0x11e   :  { %v234_v55 = vpop.f32.mrf.mxu0 }
 0x11f   :  { %v638_v35 = vmul.f32 -1.442695, %v345_v33 }
 0x120   :  { %v737_v56 = vpop.f32.mrf.mxu0 }
 0x121   :  { %836 = vpow2.f32 %v638_v35 }
 0x122   :  { %v237_v57 = vpop.f32.mrf.mxu0 }
 0x124   :  { %v738_v58 = vpop.f32.mrf.mxu0 }
 0x126   :  { %v242_v14 = vpop.f32.mrf.mxu0 }
 0x128   :  { %v741_v15 = vpop.f32.mrf.mxu0 }
 0x12a   :  { %v835_v36 = vpop.eup %834  ;;  %v1146_v16 = vpop.f32.mrf.mxu0 }
 0x12b   :  { %v352_v37 = vadd.f32 1.0, %v835_v36 }
 0x12d   :  { %838 = vrcp.f32 %v352_v37 }
 0x12e   :  { %v837_v38 = vpop.eup %836 }
 0x12f   :  { %v353_v39 = vadd.f32 1.0, %v837_v38 }
 0x131   :  { %840 = vrcp.f32 %v353_v39 }
 0x13a   :  { %v839_v40 = vpop.eup %838 }
 0x13b   :  { %358 = vrot.lane.b32.xlu0 %v839_v40, %s994_s7 }
 0x13e   :  { %v841_v41 = vpop.eup %840 }
 0x13f   :  { %360 = vrot.lane.b32.xlu0 %v841_v41, %s994_s7 }
 0x143   :  { %380 = vrot.lane.b32.xlu0 %v839_v40, %s1000_s4 }
 0x1ad   :  { %v359_v45 = vpop.permute.xlu0 %358 }
 0x1ae   :  { %v370_v46 = vmul.f32 %v368_v44, %v359_v45 }
 0x1b0   :  { %v372_v48 = vadd.f32 %v370_v46, %v227_v23  ;;  %v238_v23 = vadd.f32 %v1107_v21, %v237_v57 }
 0x1b1   :  { %v361_v49 = vpop.permute.xlu0 %360 }
 0x1b2   :  { %v371_v50 = vmul.f32 %v369_v47, %v361_v49  ;;  %842 = vtanh.f32 %v372_v48 }
 0x1b4   :  { %v373_v52 = vadd.f32 %v371_v50, %v230_v30 }
 0x1b5   :  { %v381_v62 = vpop.permute.xlu0 %380 }
 0x1b6   :  { %844 = vtanh.f32 %v373_v52 }
 0x1bf   :  { %v843_v53 = vpop.eup %842 }
 0x1c0   :  { %376 = vrot.lane.b32.xlu1 %v843_v53, %s994_s7 }
 0x1c3   :  { %v845_v54 = vpop.eup %844 }
 0x1c4   :  { %378 = vrot.lane.b32.xlu1 %v845_v54, %s994_s7 }
 0x1c8   :  { %382 = vrot.lane.b32.xlu1 %v841_v41, %s1000_s4 }
 0x232   :  { %v377_v60 = vpop.permute.xlu1 %376 }
 0x233   :  { %v384_v61 = vsub.f32 %v1077_v17, %v377_v60  ;;  %v742_v17 = vpop.f32.mrf.mxu0 }
 0x235   :  { %v386_v63 = vmul.f32 %v384_v61, %v381_v62  ;;  %v243_v62 = vadd.f32 %v1107_v21, %v242_v14 }
 0x236   :  { %v379_v1 = vpop.permute.xlu1 %378 }
 0x237   :  { %v388_v2 = vadd.f32 %v386_v63, %v377_v60  ;;  %v385_v3 = vsub.f32 %v1079_v18, %v379_v1  ;;  %v235_v18 = vadd.f32 %v1107_v21, %v234_v55 }
 0x239   :  { %v390_v6 = vsel %vm253_vm1, %v388_v2, 0.0 }
 0x23a   :  { %v383_v4 = vpop.permute.xlu1 %382  ;;  %846 = vtanh.f32 %v390_v6 }
 0x23b   :  { %v387_v5 = vmul.f32 %v385_v3, %v383_v4  ;;  %v246_v3 = vadd.f32 %v1107_v21, %v1146_v16 }
 0x23d   :  { %v389_v7 = vadd.f32 %v387_v5, %v379_v1 }
 0x23f   :  { %v643_v9 = vpack.c.bf16 %v389_v7, %v388_v2  ;;  %v391_v10 = vsel %vm253_vm1, %v389_v7, 0.0 }
 0x240   :  { %848 = vtanh.f32 %v391_v10 }
 0x241   :  { %780 = vmatmul.mubr.msk.bf16.vlgmr.msra.gmra.mxu0 %vm1138_vm2, %v643_v9 }
 0x247   :  { %v847_v11 = vpop.eup %846 }
 0x24d   :  { %v849_v12 = vpop.eup %848 }
 0x24e   :  { %v665_v13 = vpack.c.bf16 %v849_v12, %v847_v11 }
 0x250   :  { %666 = vst [vmem:[#allocation10] sm:$0xff] %v665_v13  }
 0x301   :  { %v439_v19 = vpop.f32.mrf.mxu0 }
 0x302   :  { %v446_v20 = vadd.f32 %v439_v19, %v235_v18  ;;  %v464_v35 = vadd.f32 %v1119_v43, %v439_v19 }
 0x303   :  { %v781_v22 = vpop.f32.mrf.mxu0 }
 0x304   :  { %v645_v24 = vmul.f32 -1.442695, %v446_v20 }
 0x305   :  { %v442_v25 = vpop.f32.mrf.mxu0 }
 0x306   :  { %850 = vpow2.f32 %v645_v24  ;;  %v447_v26 = vadd.f32 %v442_v25, %v238_v23  ;;  %v465_v38 = vadd.f32 %v1119_v43, %v442_v25 }
 0x307   :  { %v782_v27 = vpop.f32.mrf.mxu0 }
 0x308   :  { %v646_v28 = vmul.f32 -1.442695, %v447_v26 }
 0x30a   :  { %852 = vpow2.f32 %v646_v28 }
 0x313   :  { %v851_v29 = vpop.eup %850 }
 0x314   :  { %v454_v30 = vadd.f32 1.0, %v851_v29 }
 0x316   :  { %854 = vrcp.f32 %v454_v30 }
 0x317   :  { %v853_v31 = vpop.eup %852 }
 0x318   :  { %v455_v32 = vadd.f32 1.0, %v853_v31 }
 0x31a   :  { %856 = vrcp.f32 %v455_v32 }
 0x323   :  { %v855_v33 = vpop.eup %854 }
 0x324   :  { %460 = vrot.lane.b32.xlu0 %v855_v33, %s994_s7 }
 0x327   :  { %v857_v34 = vpop.eup %856 }
 0x328   :  { %462 = vrot.lane.b32.xlu1 %v857_v34, %s994_s7 }
 0x396   :  { %v461_v36 = vpop.permute.xlu0 %460 }
 0x397   :  { %v466_v37 = vmul.f32 %v464_v35, %v461_v36 }
 0x399   :  { %v468_v39 = vadd.f32 %v466_v37, %v235_v18 }
 0x39a   :  { %v463_v40 = vpop.permute.xlu1 %462 }
 0x39b   :  { %858 = vtanh.f32 %v468_v39  ;;  %v467_v41 = vmul.f32 %v465_v38, %v463_v40 }
 0x39d   :  { %v469_v42 = vadd.f32 %v467_v41, %v238_v23 }
 0x39f   :  { %860 = vtanh.f32 %v469_v42 }
 0x3a8   :  { %v859_v44 = vpop.eup %858 }
 0x3a9   :  { %472 = vrot.lane.b32.xlu0 %v859_v44, %s994_s7 }
 0x3ac   :  { %v861_v45 = vpop.eup %860 }
 0x3ad   :  { %476 = vrot.lane.b32.xlu0 %v855_v33, %s1000_s4  ;;  %474 = vrot.lane.b32.xlu1 %v861_v45, %s994_s7 }
 0x3b1   :  { %478 = vrot.lane.b32.xlu1 %v857_v34, %s1000_s4 }
 0x41b   :  { %v473_v46 = vpop.permute.xlu0 %472 }
 0x41c   :  { %v480_v47 = vsub.f32 %v390_v6, %v473_v46 }
 0x41f   :  { %v477_v48 = vpop.permute.xlu0 %476  ;;  %v475_v49 = vpop.permute.xlu1 %474 }
 0x420   :  { %v482_v50 = vmul.f32 %v480_v47, %v477_v48  ;;  %v481_v52 = vsub.f32 %v391_v10, %v475_v49 }
 0x422   :  { %v484_v51 = vadd.f32 %v482_v50, %v473_v46 }
 0x423   :  { %v479_v53 = vpop.permute.xlu1 %478 }
 0x424   :  { %v483_v54 = vmul.f32 %v481_v52, %v479_v53  ;;  %v486_v55 = vsel %vm253_vm1, %v484_v51, 0.0 }
 0x425   :  { %862 = vtanh.f32 %v486_v55 }
 0x426   :  { %v485_v56 = vadd.f32 %v483_v54, %v475_v49 }
 0x428   :  { %v650_v57 = vpack.c.bf16 %v485_v56, %v484_v51  ;;  %v487_v58 = vsel %vm253_vm1, %v485_v56, 0.0 }
 0x429   :  { %864 = vtanh.f32 %v487_v58 }
 0x42a   :  { %800 = vmatmul.mubr.msk.bf16.vlgmr.msra.gmra.mxu1 %vm1138_vm2, %v650_v57 }
 0x432   :  { %v863_v59 = vpop.eup %862 }
 0x436   :  { %v865_v60 = vpop.eup %864 }
 0x437   :  { %v670_v61 = vpack.c.bf16 %v865_v60, %v863_v59 }
 0x439   :  { %671 = vst [vmem:[#allocation10 + $0x8] sm:$0xff] %v670_v61  }
 0x4ea   :  { %v536_v63 = vpop.f32.mrf.mxu1 }
 0x4eb   :  { %v543_v1 = vadd.f32 %v536_v63, %v243_v62  ;;  %v561_v21 = vadd.f32 %v1119_v43, %v536_v63 }
 0x4ec   :  { %v801_v2 = vpop.f32.mrf.mxu1 }
 0x4ed   :  { %v652_v4 = vmul.f32 -1.442695, %v543_v1 }
 0x4ee   :  { %v539_v5 = vpop.f32.mrf.mxu1 }
 0x4ef   :  { %866 = vpow2.f32 %v652_v4  ;;  %v544_v6 = vadd.f32 %v539_v5, %v246_v3  ;;  %v562_v17 = vadd.f32 %v1119_v43, %v539_v5 }
 0x4f0   :  { %v802_v7 = vpop.f32.mrf.mxu1 }
 0x4f1   :  { %v653_v9 = vmul.f32 -1.442695, %v544_v6 }
 0x4f3   :  { %868 = vpow2.f32 %v653_v9 }
 0x4fc   :  { %v867_v8 = vpop.eup %866 }
 0x4fd   :  { %v551_v10 = vadd.f32 1.0, %v867_v8 }
 0x4ff   :  { %870 = vrcp.f32 %v551_v10 }
 0x500   :  { %v869_v11 = vpop.eup %868 }
 0x501   :  { %v552_v12 = vadd.f32 1.0, %v869_v11 }
 0x503   :  { %872 = vrcp.f32 %v552_v12 }
 0x50c   :  { %v871_v13 = vpop.eup %870 }
 0x50d   :  { %557 = vrot.lane.b32.xlu0 %v871_v13, %s994_s7 }
 0x510   :  { %v873_v14 = vpop.eup %872 }
 0x511   :  { %559 = vrot.lane.b32.xlu1 %v873_v14, %s994_s7 }
 0x57f   :  { %v558_v15 = vpop.permute.xlu0 %557 }
 0x580   :  { %v563_v16 = vmul.f32 %v561_v21, %v558_v15 }
 0x582   :  { %v565_v18 = vadd.f32 %v563_v16, %v243_v62 }
 0x583   :  { %v560_v19 = vpop.permute.xlu1 %559 }
 0x584   :  { %874 = vtanh.f32 %v565_v18  ;;  %v564_v20 = vmul.f32 %v562_v17, %v560_v19 }
 0x586   :  { %v566_v22 = vadd.f32 %v564_v20, %v246_v3 }
 0x588   :  { %876 = vtanh.f32 %v566_v22 }
 0x591   :  { %v875_v23 = vpop.eup %874 }
 0x592   :  { %569 = vrot.lane.b32.xlu0 %v875_v23, %s994_s7 }
 0x595   :  { %v877_v24 = vpop.eup %876 }
 0x596   :  { %573 = vrot.lane.b32.xlu0 %v871_v13, %s1000_s4  ;;  %571 = vrot.lane.b32.xlu1 %v877_v24, %s994_s7 }
 0x59a   :  { %575 = vrot.lane.b32.xlu1 %v873_v14, %s1000_s4 }
 0x604   :  { %v570_v25 = vpop.permute.xlu0 %569 }
 0x605   :  { %v577_v26 = vsub.f32 %v486_v55, %v570_v25 }
 0x608   :  { %v574_v27 = vpop.permute.xlu0 %573  ;;  %v572_v43 = vpop.permute.xlu1 %571 }
 0x609   :  { %v579_v28 = vmul.f32 %v577_v26, %v574_v27  ;;  %v578_v30 = vsub.f32 %v487_v58, %v572_v43 }
 0x60b   :  { %v581_v29 = vadd.f32 %v579_v28, %v570_v25 }
 0x60c   :  { %v576_v31 = vpop.permute.xlu1 %575 }
 0x60d   :  { %v580_v32 = vmul.f32 %v578_v30, %v576_v31  ;;  %v583_v33 = vsel %vm253_vm1, %v581_v29, 0.0 }
 0x60e   :  { %878 = vtanh.f32 %v583_v33 }
 0x60f   :  { %v582_v34 = vadd.f32 %v580_v32, %v572_v43 }
 0x611   :  { %v584_v35 = vsel %vm253_vm1, %v582_v34, 0.0 }
 0x612   :  { %880 = vtanh.f32 %v584_v35 }
 0x61b   :  { %v879_v36 = vpop.eup %878 }
 0x61f   :  { %v881_v37 = vpop.eup %880 }
 0x620   :  { %v675_v38 = vpack.c.bf16 %v881_v37, %v879_v36 }
 0x622   :  { %676 = vst [vmem:[#allocation10 + $0x10] sm:$0xff] %v675_v38  }
 0x623   :  { %973 = shalt.err (!%p970_p10)
}
 0x624   :  { %609 = dma.vmem_to_hbm [thread:$0]  %s604_s21, 384, %s1191_s6, [#allocation4], %s994_s7, %s994_s7, %s995_s8  }
 0x625   :  { %988 = dma.done.wait [#allocation4], 384  }
 0x626   :  { %989 = vsyncadd [#allocation4], 4294966912 }
 0x627   :  { %613 = vsyncpa [#allocation3], 1 }
 0x628   :  { %614 = vsyncpa [#allocation6], 1 }
 0x629   :  { %615 = vsyncpa [#allocation9], 1 }
 0x62a   :  { %616 = vsyncpa [#allocation4], 1 }

// kernel: tpu_custom_call.1
= control target key start
LH: loop header
LB: loop body
LE: loop exit
PB: predicated region body
PF: predicated region fallthrough
CT: control target
= control target key end

     0   :  { %11 = vsyncpa [#allocation3], 0  ;;  %s1185_s0 = inlined_call_operand.hbm [shape: bf16[3,16,128], index: 0, kind: input, shape index: {}]   ;;  %s1186_s1 = inlined_call_operand.hbm [shape: f32[16,128], index: 1, kind: input, shape index: {}]   ;;  %s1187_s2 = inlined_call_operand.hbm [shape: bf16[128,128], index: 2, kind: input, shape index: {}]   ;;  %s1188_s3 = inlined_call_operand.hbm [shape: bf16[128,128], index: 3, kind: input, shape index: {}]   ;;  %s1189_s4 = inlined_call_operand.vmem [shape: f32[1,128], index: 4, kind: input, shape index: {}]   ;;  %s1190_s5 = inlined_call_operand.vmem [shape: f32[1,128], index: 5, kind: input, shape index: {}]   ;;  %s1191_s6 = inlined_call_operand.hbm [shape: bf16[3,16,128], index: 6, kind: output, shape index: {}]  }
   0x1   :  { %12 = vsyncpa [#allocation6], 0 }
   0x2   :  { %13 = vsyncpa [#allocation9], 0 }
   0x3   :  { %14 = vsyncpa [#allocation4], 0  ;;  %s990_s21 = smov [#allocation5]  }
   0x4   :  { %s32_s22 = sshll.u32 %s990_s21, 4  ;;  %s33_s22 = int_to_ptr.vmem [resolvable:$true] %s32_s22 }
   0x5   :  { %s890_s23 = scalar_lea.vmem %s33_s22, 256  ;;  %p895_p1 = scmp.lt.s32.totalorder %s33_s22, %s33_s22 }
   0x6   :  { %p891_p0 = scmp.ne.s32.totalorder %s33_s22, %s890_s23  ;;  %p896_p2 = scmp.lt.s32.totalorder %s890_s23, %s890_s23 }
   0x8   :  { %p897_p3 = por %p896_p2, %p895_p1 }
   0xa   :  { %p898_p4 = pnand %p897_p3, %p891_p0 }
   0xc   :  { %901 = shalt.err (!%p898_p4)
}
   0xd   :  { %s991_s24 = smov 128   ;;  %s992_s25 = smov 8  }
   0xe   :  { %38 = dma.hbm_to_vmem [thread:$0]  %s1186_s1, 256, %s33_s22, [#allocation6], %s991_s24, %s991_s24, %s992_s25  }
   0xf   :  { %s993_s28 = smov [#allocation2]  }
  0x10   :  { %s20_s29 = sshll.u32 %s993_s28, 4  ;;  %s21_s29 = int_to_ptr.vmem [resolvable:$true] %s20_s29 }
  0x11   :  { %s910_s30 = scalar_lea.vmem %s21_s29, 384  ;;  %p915_p6 = scmp.lt.s32.totalorder %s21_s29, %s21_s29 }
  0x12   :  { %p911_p5 = scmp.ne.s32.totalorder %s21_s29, %s910_s30  ;;  %p916_p7 = scmp.lt.s32.totalorder %s910_s30, %s910_s30 }
  0x14   :  { %p917_p8 = por %p916_p7, %p915_p6 }
  0x16   :  { %p918_p9 = pnand %p917_p8, %p911_p5 }
  0x18   :  { %921 = shalt.err (!%p918_p9)
}
  0x19   :  { %s994_s7 = smov 64   ;;  %s995_s8 = smov 4  }
  0x1a   :  { %26 = dma.hbm_to_vmem [thread:$0]  %s1185_s0, 384, %s21_s29, [#allocation3], %s994_s7, %s994_s7, %s995_s8  }
  0x1b   :  { %s996_s1 = smov [#allocation7]   ;;  %s997_s12 = smov [#allocation8]  }
  0x1c   :  { %s44_s11 = sshll.u32 %s996_s1, 4  ;;  %s56_s13 = sshll.u32 %s997_s12, 4  ;;  %s45_s11 = int_to_ptr.vmem [resolvable:$true] %s44_s11  ;;  %s57_s13 = int_to_ptr.vmem [resolvable:$true] %s56_s13 }
  0x1d   :  { %s930_s14 = scalar_lea.vmem %s45_s11, 1024  ;;  %p935_p11 = scmp.lt.s32.totalorder %s45_s11, %s45_s11 }
  0x1e   :  { %p931_p10 = scmp.ne.s32.totalorder %s45_s11, %s930_s14  ;;  %p936_p12 = scmp.lt.s32.totalorder %s930_s14, %s930_s14 }
  0x20   :  { %p937_p13 = por %p936_p12, %p935_p11 }
  0x22   :  { %p938_p0 = pnand %p937_p13, %p931_p10 }
  0x24   :  { %941 = shalt.err (!%p938_p0)
}
  0x25   :  { %50 = dma.hbm_to_vmem [thread:$0]  %s1187_s2, 1024, %s45_s11, [#allocation6], %s994_s7, %s994_s7, %s995_s8  }
  0x26   :  { %s950_s0 = scalar_lea.vmem %s57_s13, 1024  ;;  %p955_p2 = scmp.lt.s32.totalorder %s57_s13, %s57_s13 }
  0x27   :  { %p951_p1 = scmp.ne.s32.totalorder %s57_s13, %s950_s0  ;;  %p956_p3 = scmp.lt.s32.totalorder %s950_s0, %s950_s0 }
  0x29   :  { %p957_p4 = por %p956_p3, %p955_p2 }
  0x2b   :  { %p958_p5 = pnand %p957_p4, %p951_p1 }
  0x2d   :  { %961 = shalt.err (!%p958_p5)
}
  0x2e   :  { %62 = dma.hbm_to_vmem [thread:$0]  %s1188_s3, 1024, %s57_s13, [#allocation9], %s994_s7, %s994_s7, %s995_s8  }
  0x2f   :  { %982 = dma.done.wait [#allocation3], 384  }
  0x30   :  { %983 = vsyncadd [#allocation3], 4294966912 }
  0x31   :  { %984 = dma.done.wait [#allocation6], 1280  }
  0x32   :  { %985 = vsyncadd [#allocation6], 4294966016 }
  0x33   :  { %986 = dma.done.wait [#allocation9], 1024  }
  0x34   :  { %987 = vsyncadd [#allocation9], 4294966272  ;;  %v998_v0 = vmov 0.0   ;;  %vm999_vm0 = vmmov 0   ;;  %v815_v1 = vld [vmem:[#allocation7 + $0x38] sm:$0xff]   ;;  %v817_v3 = vld [vmem:[#allocation7 + $0x30] sm:$0xff]   ;;  %v251_v59 = vlaneseq }
  0x35   :  { %715 = vmatprep.subr.bf16.mxu0 %v998_v0  ;;  %743 = vmatprep.subr.bf16.mxu1 %v998_v0  ;;  %v816_v2 = vld [vmem:[#allocation8 + $0x38] sm:$0xff]   ;;  %v818_v4 = vld [vmem:[#allocation8 + $0x30] sm:$0xff]   ;;  %v819_v5 = vld [vmem:[#allocation7 + $0x28] sm:$0xff]  }
  0x36   :  { %731 = vmatprep.mubr.msk.bf16.mxu0 %vm999_vm0, %v998_v0  ;;  %759 = vmatprep.mubr.msk.bf16.mxu1 %vm999_vm0, %v998_v0  ;;  %v820_v6 = vld [vmem:[#allocation8 + $0x28] sm:$0xff]   ;;  %v821_v7 = vld [vmem:[#allocation7 + $0x20] sm:$0xff]   ;;  %v823_v9 = vld [vmem:[#allocation7 + $0x18] sm:$0xff]  }
  0x37   :  { %716 = vmatpush3.bf16.msra.mxu0 %v815_v1  ;;  %744 = vmatpush3.bf16.msra.mxu1 %v816_v2  ;;  %v822_v8 = vld [vmem:[#allocation8 + $0x20] sm:$0xff]   ;;  %v824_v10 = vld [vmem:[#allocation8 + $0x18] sm:$0xff]   ;;  %v825_v11 = vld [vmem:[#allocation7 + $0x10] sm:$0xff]  }
  0x38   :  { %717 = vmatprep.subr.bf16.mxu0 %v998_v0  ;;  %745 = vmatprep.subr.bf16.mxu1 %v998_v0  ;;  %v826_v12 = vld [vmem:[#allocation8 + $0x10] sm:$0xff]   ;;  %v827_v13 = vld [vmem:[#allocation7 + $0x8] sm:$0xff]   ;;  %v829_v15 = vld [vmem:[#allocation7] sm:$0xff]  }
  0x39   :  { %v828_v14 = vld [vmem:[#allocation8 + $0x8] sm:$0xff]   ;;  %v830_v16 = vld [vmem:[#allocation8] sm:$0xff]   ;;  %v1077_v17 = vld [vmem:[#allocation5] sm:$0xff] }
  0x3a   :  { %v1079_v18 = vld [vmem:[#allocation5 + $0x8] sm:$0xff]  ;;  %v832_v42 = vld [vmem:[#allocation2 + $0x8] sm:$0xff]   ;;  %v833_v51 = vld [vmem:[#allocation2 + $0x10] sm:$0xff]  }
  0x3b   :  { %718 = vmatpush3.bf16.msra.mxu0 %v817_v3  ;;  %746 = vmatpush3.bf16.msra.mxu1 %v818_v4  ;;  %v831_v19 = vld [vmem:[#allocation2] sm:$0xff]   ;;  %v254_v20 = vpack.c.bf16 %v1079_v18, %v1077_v17 }
  0x3c   :  { %719 = vmatprep.subr.bf16.mxu0 %v998_v0  ;;  %747 = vmatprep.subr.bf16.mxu1 %v998_v0  ;;  %v1107_v21 = vld [vmem:[%s1189_s4] ss:$0 sm:$0xff]  ;;  %s1000_s4 = smov 96  }
  0x3d   :  { %v1119_v43 = vld [vmem:[%s1190_s5] ss:$0 sm:$0xff]  ;;  %s1001_s5 = smov [#allocation10]  }
  0x3e   :  { %s603_s21 = sshll.u32 %s1001_s5, 4  ;;  %s604_s21 = int_to_ptr.vmem [resolvable:$true] %s603_s21 }
  0x3f   :  { %720 = vmatpush3.bf16.msra.mxu0 %v819_v5  ;;  %748 = vmatpush3.bf16.msra.mxu1 %v820_v6  ;;  %s962_s22 = scalar_lea.vmem %s604_s21, 384  ;;  %p967_p7 = scmp.lt.s32.totalorder %s604_s21, %s604_s21 }
  0x40   :  { %721 = vmatprep.subr.bf16.mxu0 %v998_v0  ;;  %749 = vmatprep.subr.bf16.mxu1 %v998_v0  ;;  %p963_p6 = scmp.ne.s32.totalorder %s604_s21, %s962_s22  ;;  %p968_p8 = scmp.lt.s32.totalorder %s962_s22, %s962_s22 }
  0x42   :  { %p969_p9 = por %p968_p8, %p967_p7 }
  0x43   :  { %722 = vmatpush3.bf16.msra.mxu0 %v821_v7  ;;  %750 = vmatpush3.bf16.msra.mxu1 %v822_v8 }
  0x44   :  { %723 = vmatprep.subr.bf16.mxu0 %v998_v0  ;;  %751 = vmatprep.subr.bf16.mxu1 %v998_v0  ;;  %p970_p10 = pnand %p969_p9, %p963_p6 }
  0x47   :  { %724 = vmatpush3.bf16.msra.mxu0 %v823_v9  ;;  %752 = vmatpush3.bf16.msra.mxu1 %v824_v10 }
  0x48   :  { %725 = vmatprep.subr.bf16.mxu0 %v998_v0  ;;  %753 = vmatprep.subr.bf16.mxu1 %v998_v0 }
  0x4b   :  { %726 = vmatpush3.bf16.msra.mxu0 %v825_v11  ;;  %754 = vmatpush3.bf16.msra.mxu1 %v826_v12 }
  0x4c   :  { %727 = vmatprep.subr.bf16.mxu0 %v998_v0  ;;  %755 = vmatprep.subr.bf16.mxu1 %v998_v0 }
  0x4f   :  { %728 = vmatpush3.bf16.msra.mxu0 %v827_v13  ;;  %756 = vmatpush3.bf16.msra.mxu1 %v828_v14 }
  0x50   :  { %729 = vmatprep.subr.bf16.mxu0 %v998_v0  ;;  %757 = vmatprep.subr.bf16.mxu1 %v998_v0 }
  0x53   :  { %730 = vmatpush3.bf16.msra.mxu0 %v829_v15  ;;  %758 = vmatpush3.bf16.msra.mxu1 %v830_v16 }
  0x54   :  { %763 = vmatprep.subr.bf16.mxu0 %v998_v0  ;;  %783 = vmatprep.subr.bf16.mxu1 %v998_v0 }
  0x56   :  { %732 = vmatmul.mubr.bf16.vlgmr.msra.gmra.mxu0 %v831_v19  ;;  %760 = vmatmul.mubr.bf16.vlgmr.msra.gmra.mxu1 %v254_v20 }
  0x57   :  { %764 = vmatpush3.bf16.msra.mxu0 %v816_v2  ;;  %735 = vmatprep.mubr.msk.bf16.mxu0 %vm999_vm0, %v998_v0 }
  0x58   :  { %765 = vmatprep.subr.bf16.mxu0 %v998_v0  ;;  %784 = vmatpush3.bf16.msra.mxu1 %v816_v2 }
  0x59   :  { %799 = vmatprep.mubr.msk.bf16.mxu1 %vm999_vm0, %v998_v0  ;;  %785 = vmatprep.subr.bf16.mxu1 %v998_v0 }
  0x5b   :  { %766 = vmatpush3.bf16.msra.mxu0 %v818_v4 }
  0x5c   :  { %767 = vmatprep.subr.bf16.mxu0 %v998_v0  ;;  %786 = vmatpush3.bf16.msra.mxu1 %v818_v4 }
  0x5d   :  { %787 = vmatprep.subr.bf16.mxu1 %v998_v0 }
  0x5e   :  { %736 = vmatmul.mubr.bf16.gmra.mxu0 %v832_v42 }
  0x5f   :  { %768 = vmatpush3.bf16.msra.mxu0 %v820_v6  ;;  %739 = vmatprep.mubr.msk.bf16.mxu0 %vm999_vm0, %v998_v0 }
  0x60   :  { %769 = vmatprep.subr.bf16.mxu0 %v998_v0  ;;  %788 = vmatpush3.bf16.msra.mxu1 %v820_v6 }
  0x61   :  { %789 = vmatprep.subr.bf16.mxu1 %v998_v0 }
  0x63   :  { %770 = vmatpush3.bf16.msra.mxu0 %v822_v8 }
  0x64   :  { %771 = vmatprep.subr.bf16.mxu0 %v998_v0  ;;  %790 = vmatpush3.bf16.msra.mxu1 %v822_v8 }
  0x65   :  { %791 = vmatprep.subr.bf16.mxu1 %v998_v0 }
  0x66   :  { %740 = vmatmul.mubr.bf16.gmra.mxu0 %v833_v51 }
  0x67   :  { %772 = vmatpush3.bf16.msra.mxu0 %v824_v10  ;;  %779 = vmatprep.mubr.msk.bf16.mxu0 %vm999_vm0, %v998_v0 }
  0x68   :  { %773 = vmatprep.subr.bf16.mxu0 %v998_v0  ;;  %792 = vmatpush3.bf16.msra.mxu1 %v824_v10 }
  0x69   :  { %793 = vmatprep.subr.bf16.mxu1 %v998_v0 }
  0x6b   :  { %774 = vmatpush3.bf16.msra.mxu0 %v826_v12 }
  0x6c   :  { %775 = vmatprep.subr.bf16.mxu0 %v998_v0  ;;  %794 = vmatpush3.bf16.msra.mxu1 %v826_v12 }
  0x6d   :  { %795 = vmatprep.subr.bf16.mxu1 %v998_v0 }
  0x6f   :  { %776 = vmatpush3.bf16.msra.mxu0 %v828_v14 }
  0x70   :  { %777 = vmatprep.subr.bf16.mxu0 %v998_v0  ;;  %796 = vmatpush3.bf16.msra.mxu1 %v828_v14 }
  0x71   :  { %797 = vmatprep.subr.bf16.mxu1 %v998_v0  ;;  %v1129_v0 = vand.u32 127, %v251_v59 }
  0x73   :  { %778 = vmatpush3.bf16.msra.mxu0 %v830_v16  ;;  %vm253_vm1 = vcmp.lt.s32.totalorder %v1129_v0, 32 }
  0x74   :  { %798 = vmatpush3.bf16.msra.mxu1 %v830_v16  ;;  %vm1138_vm2 = vmpackc.low %vm253_vm1, %vm253_vm1 }
 0x116   :  { %v226_v22 = vpop.f32.mrf.mxu0  ;;  %v337_v24 = vpop.f32.mrf.mxu1 }
 0x117   :  { %v227_v23 = vadd.f32 %v1107_v21, %v226_v22  ;;  %v368_v44 = vadd.f32 %v1119_v43, %v337_v24 }
 0x118   :  { %v733_v25 = vpop.f32.mrf.mxu0  ;;  %v761_v27 = vpop.f32.mrf.mxu1 }
 0x119   :  { %v344_v26 = vadd.f32 %v337_v24, %v227_v23 }
 0x11a   :  { %v229_v28 = vpop.f32.mrf.mxu0  ;;  %v340_v31 = vpop.f32.mrf.mxu1 }
 0x11b   :  { %v637_v29 = vmul.f32 -1.442695, %v344_v26  ;;  %v230_v30 = vadd.f32 %v1107_v21, %v229_v28  ;;  %v369_v47 = vadd.f32 %v1119_v43, %v340_v31 }
 0x11c   :  { %v734_v32 = vpop.f32.mrf.mxu0  ;;  %v762_v34 = vpop.f32.mrf.mxu1 }
 0x11d   :  { %834 = vpow2.f32 %v637_v29  ;;  %v345_v33 = vadd.f32 %v340_v31, %v230_v30 }
 0x11e   :  { %v234_v55 = vpop.f32.mrf.mxu0 }
 0x11f   :  { %v638_v35 = vmul.f32 -1.442695, %v345_v33 }
 0x120   :  { %v737_v56 = vpop.f32.mrf.mxu0 }
 0x121   :  { %836 = vpow2.f32 %v638_v35 }
 0x122   :  { %v237_v57 = vpop.f32.mrf.mxu0 }
 0x124   :  { %v738_v58 = vpop.f32.mrf.mxu0 }
 0x126   :  { %v242_v14 = vpop.f32.mrf.mxu0 }
 0x128   :  { %v741_v15 = vpop.f32.mrf.mxu0 }
 0x12a   :  { %v835_v36 = vpop.eup %834  ;;  %v1146_v16 = vpop.f32.mrf.mxu0 }
 0x12b   :  { %v352_v37 = vadd.f32 1.0, %v835_v36 }
 0x12d   :  { %838 = vrcp.f32 %v352_v37 }
 0x12e   :  { %v837_v38 = vpop.eup %836 }
 0x12f   :  { %v353_v39 = vadd.f32 1.0, %v837_v38 }
 0x131   :  { %840 = vrcp.f32 %v353_v39 }
 0x13a   :  { %v839_v40 = vpop.eup %838 }
 0x13b   :  { %358 = vrot.lane.b32.xlu0 %v839_v40, %s994_s7 }
 0x13e   :  { %v841_v41 = vpop.eup %840 }
 0x13f   :  { %360 = vrot.lane.b32.xlu0 %v841_v41, %s994_s7 }
 0x143   :  { %380 = vrot.lane.b32.xlu0 %v839_v40, %s1000_s4 }
 0x1ad   :  { %v359_v45 = vpop.permute.xlu0 %358 }
 0x1ae   :  { %v370_v46 = vmul.f32 %v368_v44, %v359_v45 }
 0x1b0   :  { %v372_v48 = vadd.f32 %v370_v46, %v227_v23  ;;  %v238_v23 = vadd.f32 %v1107_v21, %v237_v57 }
 0x1b1   :  { %v361_v49 = vpop.permute.xlu0 %360 }
 0x1b2   :  { %v371_v50 = vmul.f32 %v369_v47, %v361_v49  ;;  %842 = vtanh.f32 %v372_v48 }
 0x1b4   :  { %v373_v52 = vadd.f32 %v371_v50, %v230_v30 }
 0x1b5   :  { %v381_v62 = vpop.permute.xlu0 %380 }
 0x1b6   :  { %844 = vtanh.f32 %v373_v52 }
 0x1bf   :  { %v843_v53 = vpop.eup %842 }
 0x1c0   :  { %376 = vrot.lane.b32.xlu1 %v843_v53, %s994_s7 }
 0x1c3   :  { %v845_v54 = vpop.eup %844 }
 0x1c4   :  { %378 = vrot.lane.b32.xlu1 %v845_v54, %s994_s7 }
 0x1c8   :  { %382 = vrot.lane.b32.xlu1 %v841_v41, %s1000_s4 }
 0x232   :  { %v377_v60 = vpop.permute.xlu1 %376 }
 0x233   :  { %v384_v61 = vsub.f32 %v1077_v17, %v377_v60  ;;  %v742_v17 = vpop.f32.mrf.mxu0 }
 0x235   :  { %v386_v63 = vmul.f32 %v384_v61, %v381_v62  ;;  %v243_v62 = vadd.f32 %v1107_v21, %v242_v14 }
 0x236   :  { %v379_v1 = vpop.permute.xlu1 %378 }
 0x237   :  { %v388_v2 = vadd.f32 %v386_v63, %v377_v60  ;;  %v385_v3 = vsub.f32 %v1079_v18, %v379_v1  ;;  %v235_v18 = vadd.f32 %v1107_v21, %v234_v55 }
 0x239   :  { %v390_v6 = vsel %vm253_vm1, %v388_v2, 0.0 }
 0x23a   :  { %v383_v4 = vpop.permute.xlu1 %382  ;;  %846 = vtanh.f32 %v390_v6 }
 0x23b   :  { %v387_v5 = vmul.f32 %v385_v3, %v383_v4  ;;  %v246_v3 = vadd.f32 %v1107_v21, %v1146_v16 }
 0x23d   :  { %v389_v7 = vadd.f32 %v387_v5, %v379_v1 }
 0x23f   :  { %v643_v9 = vpack.c.bf16 %v389_v7, %v388_v2  ;;  %v391_v10 = vsel %vm253_vm1, %v389_v7, 0.0 }
 0x240   :  { %848 = vtanh.f32 %v391_v10 }
 0x241   :  { %780 = vmatmul.mubr.msk.bf16.vlgmr.msra.gmra.mxu0 %vm1138_vm2, %v643_v9 }
 0x247   :  { %v847_v11 = vpop.eup %846 }
 0x24d   :  { %v849_v12 = vpop.eup %848 }
 0x24e   :  { %v665_v13 = vpack.c.bf16 %v849_v12, %v847_v11 }
 0x250   :  { %666 = vst [vmem:[#allocation10] sm:$0xff] %v665_v13  }
 0x301   :  { %v439_v19 = vpop.f32.mrf.mxu0 }
 0x302   :  { %v446_v20 = vadd.f32 %v439_v19, %v235_v18  ;;  %v464_v35 = vadd.f32 %v1119_v43, %v439_v19 }
 0x303   :  { %v781_v22 = vpop.f32.mrf.mxu0 }
 0x304   :  { %v645_v24 = vmul.f32 -1.442695, %v446_v20 }
 0x305   :  { %v442_v25 = vpop.f32.mrf.mxu0 }
 0x306   :  { %850 = vpow2.f32 %v645_v24  ;;  %v447_v26 = vadd.f32 %v442_v25, %v238_v23  ;;  %v465_v38 = vadd.f32 %v1119_v43, %v442_v25 }
 0x307   :  { %v782_v27 = vpop.f32.mrf.mxu0 }
 0x308   :  { %v646_v28 = vmul.f32 -1.442695, %v447_v26 }
 0x30a   :  { %852 = vpow2.f32 %v646_v28 }
 0x313   :  { %v851_v29 = vpop.eup %850 }
 0x314   :  { %v454_v30 = vadd.f32 1.0, %v851_v29 }
 0x316   :  { %854 = vrcp.f32 %v454_v30 }
 0x317   :  { %v853_v31 = vpop.eup %852 }
 0x318   :  { %v455_v32 = vadd.f32 1.0, %v853_v31 }
 0x31a   :  { %856 = vrcp.f32 %v455_v32 }
 0x323   :  { %v855_v33 = vpop.eup %854 }
 0x324   :  { %460 = vrot.lane.b32.xlu0 %v855_v33, %s994_s7 }
 0x327   :  { %v857_v34 = vpop.eup %856 }
 0x328   :  { %462 = vrot.lane.b32.xlu1 %v857_v34, %s994_s7 }
 0x396   :  { %v461_v36 = vpop.permute.xlu0 %460 }
 0x397   :  { %v466_v37 = vmul.f32 %v464_v35, %v461_v36 }
 0x399   :  { %v468_v39 = vadd.f32 %v466_v37, %v235_v18 }
 0x39a   :  { %v463_v40 = vpop.permute.xlu1 %462 }
 0x39b   :  { %858 = vtanh.f32 %v468_v39  ;;  %v467_v41 = vmul.f32 %v465_v38, %v463_v40 }
 0x39d   :  { %v469_v42 = vadd.f32 %v467_v41, %v238_v23 }
 0x39f   :  { %860 = vtanh.f32 %v469_v42 }
 0x3a8   :  { %v859_v44 = vpop.eup %858 }
 0x3a9   :  { %472 = vrot.lane.b32.xlu0 %v859_v44, %s994_s7 }
 0x3ac   :  { %v861_v45 = vpop.eup %860 }
 0x3ad   :  { %476 = vrot.lane.b32.xlu0 %v855_v33, %s1000_s4  ;;  %474 = vrot.lane.b32.xlu1 %v861_v45, %s994_s7 }
 0x3b1   :  { %478 = vrot.lane.b32.xlu1 %v857_v34, %s1000_s4 }
 0x41b   :  { %v473_v46 = vpop.permute.xlu0 %472 }
 0x41c   :  { %v480_v47 = vsub.f32 %v390_v6, %v473_v46 }
 0x41f   :  { %v477_v48 = vpop.permute.xlu0 %476  ;;  %v475_v49 = vpop.permute.xlu1 %474 }
 0x420   :  { %v482_v50 = vmul.f32 %v480_v47, %v477_v48  ;;  %v481_v52 = vsub.f32 %v391_v10, %v475_v49 }
 0x422   :  { %v484_v51 = vadd.f32 %v482_v50, %v473_v46 }
 0x423   :  { %v479_v53 = vpop.permute.xlu1 %478 }
 0x424   :  { %v483_v54 = vmul.f32 %v481_v52, %v479_v53  ;;  %v486_v55 = vsel %vm253_vm1, %v484_v51, 0.0 }
 0x425   :  { %862 = vtanh.f32 %v486_v55 }
 0x426   :  { %v485_v56 = vadd.f32 %v483_v54, %v475_v49 }
 0x428   :  { %v650_v57 = vpack.c.bf16 %v485_v56, %v484_v51  ;;  %v487_v58 = vsel %vm253_vm1, %v485_v56, 0.0 }
 0x429   :  { %864 = vtanh.f32 %v487_v58 }
 0x42a   :  { %800 = vmatmul.mubr.msk.bf16.vlgmr.msra.gmra.mxu1 %vm1138_vm2, %v650_v57 }
 0x432   :  { %v863_v59 = vpop.eup %862 }
 0x436   :  { %v865_v60 = vpop.eup %864 }
 0x437   :  { %v670_v61 = vpack.c.bf16 %v865_v60, %v863_v59 }
 0x439   :  { %671 = vst [vmem:[#allocation10 + $0x8] sm:$0xff] %v670_v61  }
 0x4ea   :  { %v536_v63 = vpop.f32.mrf.mxu1 }
 0x4eb   :  { %v543_v1 = vadd.f32 %v536_v63, %v243_v62  ;;  %v561_v21 = vadd.f32 %v1119_v43, %v536_v63 }
 0x4ec   :  { %v801_v2 = vpop.f32.mrf.mxu1 }
 0x4ed   :  { %v652_v4 = vmul.f32 -1.442695, %v543_v1 }
 0x4ee   :  { %v539_v5 = vpop.f32.mrf.mxu1 }
 0x4ef   :  { %866 = vpow2.f32 %v652_v4  ;;  %v544_v6 = vadd.f32 %v539_v5, %v246_v3  ;;  %v562_v17 = vadd.f32 %v1119_v43, %v539_v5 }
 0x4f0   :  { %v802_v7 = vpop.f32.mrf.mxu1 }
 0x4f1   :  { %v653_v9 = vmul.f32 -1.442695, %v544_v6 }
 0x4f3   :  { %868 = vpow2.f32 %v653_v9 }
 0x4fc   :  { %v867_v8 = vpop.eup %866 }
 0x4fd   :  { %v551_v10 = vadd.f32 1.0, %v867_v8 }
 0x4ff   :  { %870 = vrcp.f32 %v551_v10 }
 0x500   :  { %v869_v11 = vpop.eup %868 }
 0x501   :  { %v552_v12 = vadd.f32 1.0, %v869_v11 }
 0x503   :  { %872 = vrcp.f32 %v552_v12 }
 0x50c   :  { %v871_v13 = vpop.eup %870 }
 0x50d   :  { %557 = vrot.lane.b32.xlu0 %v871_v13, %s994_s7 }
 0x510   :  { %v873_v14 = vpop.eup %872 }
 0x511   :  { %559 = vrot.lane.b32.xlu1 %v873_v14, %s994_s7 }
 0x57f   :  { %v558_v15 = vpop.permute.xlu0 %557 }
 0x580   :  { %v563_v16 = vmul.f32 %v561_v21, %v558_v15 }
 0x582   :  { %v565_v18 = vadd.f32 %v563_v16, %v243_v62 }
 0x583   :  { %v560_v19 = vpop.permute.xlu1 %559 }
 0x584   :  { %874 = vtanh.f32 %v565_v18  ;;  %v564_v20 = vmul.f32 %v562_v17, %v560_v19 }
 0x586   :  { %v566_v22 = vadd.f32 %v564_v20, %v246_v3 }
 0x588   :  { %876 = vtanh.f32 %v566_v22 }
 0x591   :  { %v875_v23 = vpop.eup %874 }
 0x592   :  { %569 = vrot.lane.b32.xlu0 %v875_v23, %s994_s7 }
 0x595   :  { %v877_v24 = vpop.eup %876 }
 0x596   :  { %573 = vrot.lane.b32.xlu0 %v871_v13, %s1000_s4  ;;  %571 = vrot.lane.b32.xlu1 %v877_v24, %s994_s7 }
 0x59a   :  { %575 = vrot.lane.b32.xlu1 %v873_v14, %s1000_s4 }
 0x604   :  { %v570_v25 = vpop.permute.xlu0 %569 }
 0x605   :  { %v577_v26 = vsub.f32 %v486_v55, %v570_v25 }
 0x608   :  { %v574_v27 = vpop.permute.xlu0 %573  ;;  %v572_v43 = vpop.permute.xlu1 %571 }
 0x609   :  { %v579_v28 = vmul.f32 %v577_v26, %v574_v27  ;;  %v578_v30 = vsub.f32 %v487_v58, %v572_v43 }
 0x60b   :  { %v581_v29 = vadd.f32 %v579_v28, %v570_v25 }
 0x60c   :  { %v576_v31 = vpop.permute.xlu1 %575 }
 0x60d   :  { %v580_v32 = vmul.f32 %v578_v30, %v576_v31  ;;  %v583_v33 = vsel %vm253_vm1, %v581_v29, 0.0 }
 0x60e   :  { %878 = vtanh.f32 %v583_v33 }
 0x60f   :  { %v582_v34 = vadd.f32 %v580_v32, %v572_v43 }
 0x611   :  { %v584_v35 = vsel %vm253_vm1, %v582_v34, 0.0 }
 0x612   :  { %880 = vtanh.f32 %v584_v35 }
 0x61b   :  { %v879_v36 = vpop.eup %878 }
 0x61f   :  { %v881_v37 = vpop.eup %880 }
 0x620   :  { %v675_v38 = vpack.c.bf16 %v881_v37, %v879_v36 }
 0x622   :  { %676 = vst [vmem:[#allocation10 + $0x10] sm:$0xff] %v675_v38  }
 0x623   :  { %973 = shalt.err (!%p970_p10)
}
 0x624   :  { %609 = dma.vmem_to_hbm [thread:$0]  %s604_s21, 384, %s1191_s6, [#allocation4], %s994_s7, %s994_s7, %s995_s8  }
 0x625   :  { %988 = dma.done.wait [#allocation4], 384  }
 0x626   :  { %989 = vsyncadd [#allocation4], 4294966912 }
 0x627   :  { %613 = vsyncpa [#allocation3], 1 }
 0x628   :  { %614 = vsyncpa [#allocation6], 1 }
 0x629   :  { %615 = vsyncpa [#allocation9], 1 }
 0x62a   :  { %616 = vsyncpa [#allocation4], 1 }

</bundles_post_ra>
